<compile_context>
chip_gen: v5e
topology: v5e:2x2
jax: 0.10.0
libtpu: 0.0.40
codegen_flags: <defaults>
</compile_context>

<pallas_src>
import math
from functools import partial

import jax
import jax.numpy as jnp
from jax import lax
from jax.experimental import pallas as pl
from jax.experimental.pallas import tpu as pltpu

# bf16 matmul operands / f32 accumulation on the MXU (set to jnp.float32 for full f32).
MXU_DTYPE = jnp.bfloat16


# -----------------------------------------------------------------------------
# Fused ResidualUnit kernel
# -----------------------------------------------------------------------------
def _residual_unit_kernel(x_ref, halo_ref, w1_ref, a1_ref, b1_ref,
                          w2_ref, a2_ref, b2_ref, o_ref, *,
                          K, dilation, halo, tile_t, seq_len, mask_tail):
    # x_ref:    (1, C, TILE_T)      f32  main time tile (also the residual input)
    # halo_ref: (1, 1, C, HALO_W)   f32  [left halo | right halo | zero fill] (HALO_W=128k)
    # w1_ref:   (K, C, C)           bf16 dilated k=7 conv weight, tap-major
    # w2_ref:   (C, C)              bf16 1x1 conv weight
    # a*_ref/b*_ref: (C, 1)         f32  snake alphas / conv biases
    # o_ref:    (1, C, TILE_T)      f32
    x = x_ref[0]                                        # (C, TILE_T)

    if mask_tail:
        # Last tile may extend past the sequence end; the padded region of the input
        # block is unspecified, so force it to zero (snake(0)=0 keeps conv semantics,
        # and Pallas drops the out-of-bounds part of the output writeback).
        valid = seq_len - pl.program_id(1) * tile_t
        lane = lax.broadcasted_iota(jnp.int32, (1, tile_t), 1)
        x = jnp.where(lane < valid, x, 0.0)

    a1 = a1_ref[...]
    inv_a1 = 1.0 / (a1 + 1e-9)
    a2 = a2_ref[...]
    inv_a2 = 1.0 / (a2 + 1e-9)

    def snake1(v):
        return v + inv_a1 * jnp.square(jnp.sin(a1 * v))

    # Cast to bf16 right after the (f32) snake so all window temporaries are half-width.
    sx = snake1(x).astype(MXU_DTYPE)                    # (C, TILE_T)
    sh = snake1(halo_ref[0, 0]).astype(MXU_DTYPE)       # (C, HALO_W); snake(0)=0 on the fill

    # Window of snake(x) covering [t*TILE_T - halo, t*TILE_T + TILE_T + halo).
    window = jnp.concatenate(
        [sh[:, :halo], sx, sh[:, halo:2 * halo]], axis=1)   # (C, TILE_T + 2*halo) bf16

    # Dilated k=7 conv as K-step MXU accumulation (f32 accumulator).
    h1 = jnp.dot(w1_ref[0], window[:, :tile_t],
                 preferred_element_type=jnp.float32)
    for k in range(1, K):
        h1 = h1 + jnp.dot(w1_ref[k],
                          window[:, k * dilation:k * dilation + tile_t],
                          preferred_element_type=jnp.float32)
    h1 = h1 + b1_ref[...]                               # (C, TILE_T) f32

    # snake2 (f32) -> 1x1 conv (bf16 operands, f32 accumulation).
    s2 = (h1 + inv_a2 * jnp.square(jnp.sin(a2 * h1))).astype(MXU_DTYPE)
    y = jnp.dot(w2_ref[...], s2, preferred_element_type=jnp.float32) + b2_ref[...]

    o_ref[0] = (x + y).astype(o_ref.dtype)              # residual add


def _pick_tile_t(B, C, T, K, *, want_steps=8, max_tile=2048):
    """Largest multiple-of-128 time tile fitting a conservative VMEM budget that also
    accounts for the (double-buffered) weights and the bf16 window, while leaving at
    least ~want_steps grid steps for pipelining / v7x's two TensorCores."""
    C_p = max(C, 8)
    # weights (x2 pipeline buffers) + per-channel params + halo side-band (x2 buffers)
    fixed = 2 * ((K + 1) * C * C * 2 + 4 * C * 4) + 2 * (C_p * 128 * 4)
    budget = max((24 << 20) - fixed, 4 << 20)
    # per-time-step bytes: double-buffered f32 in+out tiles (16B) + bf16 window (2B)
    # + f32 snake/conv temporaries (~14B)
    per_t = C_p * 32
    tt = (budget // per_t) // 128 * 128
    steps_cap = max((B * T) // want_steps, 128) // 128 * 128
    t_cap = -(-T // 128) * 128
    tt = min(tt, max_tile, steps_cap, t_cap)
    return int(max(tt, 128))


def residual_unit(params, x, *, dilation=1, tile_t=None):
    """Fused ResidualUnit forward.  x: (B, C, T) f32 -> (B, C, T) f32."""
    B, C, T = x.shape
    w1, b1 = params["conv1"]["w"], params["conv1"]["b"]      # (C, C, 7), (C,)
    w2, b2 = params["conv2"]["w"], params["conv2"]["b"]      # (C, C, 1), (C,)
    a1, a2 = params["alpha1"], params["alpha2"]              # (C,), (C,)
    K = w1.shape[-1]
    halo = (K - 1) * dilation // 2                           # 3 * dilation
    halo_w = max(128, -(-2 * halo // 128) * 128)             # lane-dense halo DMA

    if tile_t is None:
        tile_t = _pick_tile_t(B, C, T, K)
    nT = -(-T // tile_t)
    mask_tail = (T % tile_t) != 0

    # --- tiny per-tile halo side-band, gathered straight from x (no full-array pads).
    # Layout along the last dim: [left halo | right halo | zero fill up to halo_w].
    starts = jnp.arange(nT, dtype=jnp.int32) * tile_t
    offs = jnp.arange(halo, dtype=jnp.int32)
    pos = jnp.concatenate(
        [starts[:, None] - halo + offs[None, :],
         starts[:, None] + tile_t + offs[None, :]], axis=1)          # (nT, 2*halo)
    ok = (pos >= 0) & (pos < T)
    gat = jnp.take(x, jnp.clip(pos, 0, T - 1).reshape(-1), axis=2)   # (B, C, nT*2*halo)
    gat = gat.reshape(B, C, nT, 2 * halo)
    gat = jnp.where(ok.reshape(1, 1, nT, 2 * halo), gat, 0.0)
    halos = jnp.transpose(gat, (0, 2, 1, 3))                         # (B, nT, C, 2*halo)
    halos = jnp.pad(halos, ((0, 0), (0, 0), (0, 0), (0, halo_w - 2 * halo)))

    # --- weight prep (once): tap-major (K, C, C) for the in-kernel K-step accumulation.
    w1_k = jnp.transpose(w1, (2, 0, 1)).astype(MXU_DTYPE)            # (K, C, C)
    w2_2d = w2[:, :, 0].astype(MXU_DTYPE)                            # (C, C)
    a1c, b1c = a1.reshape(C, 1), b1.reshape(C, 1)
    a2c, b2c = a2.reshape(C, 1), b2.reshape(C, 1)

    # --- honest VMEM footprint -> vmem_limit (<=48 MiB to stay inside v7x's 64 MiB).
    fixed = 2 * ((K + 1) * C * C * 2 + 4 * C * 4) + 2 * (max(C, 8) * halo_w * 4)
    need = fixed + max(C, 8) * 32 * tile_t + (4 << 20)
    vmem_limit = int(min(48 << 20, max(32 << 20, need)))

    flops = 2 * B * T * (K * C * C + C * C)
    bytes_accessed = (2 * B * C * T * 4 + B * nT * C * halo_w * 4
                      + (K + 1) * C * C * 2 + 4 * C * 4)

    kernel = partial(_residual_unit_kernel, K=K, dilation=dilation, halo=halo,
                     tile_t=tile_t, seq_len=T, mask_tail=mask_tail)
    return pl.pallas_call(
        kernel,
        out_shape=jax.ShapeDtypeStruct((B, C, T), jnp.float32),
        grid=(B, nT),
        in_specs=[
            pl.BlockSpec((1, C, tile_t), lambda b, t: (b, 0, t)),         # x tile
            pl.BlockSpec((1, 1, C, halo_w), lambda b, t: (b, t, 0, 0)),   # halo side-band
            pl.BlockSpec((K, C, C), lambda b, t: (0, 0, 0)),              # w1 (tap-major)
            pl.BlockSpec((C, 1), lambda b, t: (0, 0)),                    # alpha1
            pl.BlockSpec((C, 1), lambda b, t: (0, 0)),                    # bias1
            pl.BlockSpec((C, C), lambda b, t: (0, 0)),                    # w2 (1x1)
            pl.BlockSpec((C, 1), lambda b, t: (0, 0)),                    # alpha2
            pl.BlockSpec((C, 1), lambda b, t: (0, 0)),                    # bias2
        ],
        out_specs=pl.BlockSpec((1, C, tile_t), lambda b, t: (b, 0, t)),
        compiler_params=pltpu.CompilerParams(
            dimension_semantics=("parallel", "parallel"),
            vmem_limit_bytes=vmem_limit),
        cost_estimate=pl.CostEstimate(flops=int(flops),
                                      transcendentals=int(2 * B * C * T),
                                      bytes_accessed=int(bytes_accessed)),
    )(x, halos, w1_k, a1c, b1c, w2_2d, a2c, b2c)


# -----------------------------------------------------------------------------
# Pure-JAX reference (mirrors the kernel's numerics: f32 snake, bf16-rounded matmul
# operands, f32 accumulation) for a tight correctness check.
# -----------------------------------------------------------------------------
def _round_like_mxu(v):
    return v.astype(MXU_DTYPE).astype(jnp.float32)


def _snake_ref(x, alpha):
    a = alpha.reshape(1, -1, 1)
    return x + (1.0 / (a + 1e-9)) * jnp.square(jnp.sin(a * x))


def residual_unit_reference(params, x, dilation):
    C = x.shape[1]
    K = params["conv1"]["w"].shape[-1]
    pad = (K - 1) * dilation // 2
    s1 = _snake_ref(x, params["alpha1"])
    h1 = lax.conv_general_dilated(
        _round_like_mxu(s1), _round_like_mxu(params["conv1"]["w"]),
        window_strides=(1,), padding=[(pad, pad)], rhs_dilation=(dilation,),
        dimension_numbers=("NCH", "OIH", "NCH"), precision=lax.Precision.HIGHEST)
    h1 = h1 + params["conv1"]["b"].reshape(1, C, 1)
    s2 = _snake_ref(h1, params["alpha2"])
    y = lax.conv_general_dilated(
        _round_like_mxu(s2), _round_like_mxu(params["conv2"]["w"]),
        window_strides=(1,), padding=[(0, 0)],
        dimension_numbers=("NCH", "OIH", "NCH"), precision=lax.Precision.HIGHEST)
    y = y + params["conv2"]["b"].reshape(1, C, 1)
    return x + y


# -----------------------------------------------------------------------------
if __name__ == "__main__":
    B, C, T = 2, 16, 300                      # T not a multiple of 128 -> partial last tile
    key = jax.random.PRNGKey(0)
    k1, k2, k3, k4, k5, k6, k7 = jax.random.split(key, 7)

    params = {
        "alpha1": 1.0 + 0.1 * jax.random.normal(k1, (C,), jnp.float32),
        "alpha2": 1.0 + 0.1 * jax.random.normal(k2, (C,), jnp.float32),
        "conv1": {"w": (1.0 / math.sqrt(7 * C)) * jax.random.normal(k3, (C, C, 7), jnp.float32),
                  "b": 0.1 * jax.random.normal(k4, (C,), jnp.float32)},
        "conv2": {"w": (1.0 / math.sqrt(C)) * jax.random.normal(k5, (C, C, 1), jnp.float32),
                  "b": 0.1 * jax.random.normal(k6, (C,), jnp.float32)},
    }
    x = jax.random.normal(k7, (B, C, T), jnp.float32)

    # Auto tile picks 128 here -> grid (B, 3), exercising halo tiling + the masked
    # partial last tile.
    for dilation in (1, 3, 9):
        out = jax.block_until_ready(residual_unit(params, x, dilation=dilation))
        assert out.shape == (B, C, T) and out.dtype == jnp.float32
        ref = residual_unit_reference(params, x, dilation)
        err = float(jnp.max(jnp.abs(out - ref)))
        assert err < 3e-2, f"dilation={dilation}: max abs error {err}"

    # Also exercise the exact-multiple (no tail-mask) path.
    x2 = x[:, :, :256]
    out2 = jax.block_until_ready(residual_unit(params, x2, dilation=3, tile_t=128))
    ref2 = residual_unit_reference(params, x2, 3)
    assert float(jnp.max(jnp.abs(out2 - ref2))) < 3e-2

    print("KERNEL_OK")
</pallas_src>

<mosaic_0001>
module attributes {stable_mosaic.version = 11 : i64} {
  func.func @_residual_unit_kernel(%arg0: i32, %arg1: i32, %arg2: memref<1x16x128xf32, #tpu.memory_space<vmem>>, %arg3: memref<1x1x16x128xf32, #tpu.memory_space<vmem>>, %arg4: memref<7x16x16xbf16, #tpu.memory_space<vmem>>, %arg5: memref<16x1xf32, #tpu.memory_space<vmem>>, %arg6: memref<16x1xf32, #tpu.memory_space<vmem>>, %arg7: memref<16x16xbf16, #tpu.memory_space<vmem>>, %arg8: memref<16x1xf32, #tpu.memory_space<vmem>>, %arg9: memref<16x1xf32, #tpu.memory_space<vmem>>, %arg10: memref<1x16x128xf32, #tpu.memory_space<vmem>>) attributes {dimension_semantics = [#tpu.dimension_semantics<parallel>, #tpu.dimension_semantics<parallel>], iteration_bounds = array<i64: 2, 3>, scalar_prefetch = 0 : i64, scratch_operands = 0 : i64, tpu.core_type = #tpu.core_type<tc>, window_params = [{transform_indices = @transform_0, window_bounds = array<i64: 1, 16, 128>}, {transform_indices = @transform_1, window_bounds = array<i64: 1, 1, 16, 128>}, {pipeline_mode = #tpu.pipeline_mode<synchronous>, transform_indices = @transform_2, window_bounds = array<i64: 7, 16, 16>}, {pipeline_mode = #tpu.pipeline_mode<synchronous>, transform_indices = @transform_3, window_bounds = array<i64: 16, 1>}, {pipeline_mode = #tpu.pipeline_mode<synchronous>, transform_indices = @transform_4, window_bounds = array<i64: 16, 1>}, {pipeline_mode = #tpu.pipeline_mode<synchronous>, transform_indices = @transform_5, window_bounds = array<i64: 16, 16>}, {pipeline_mode = #tpu.pipeline_mode<synchronous>, transform_indices = @transform_6, window_bounds = array<i64: 16, 1>}, {pipeline_mode = #tpu.pipeline_mode<synchronous>, transform_indices = @transform_7, window_bounds = array<i64: 16, 1>}, {transform_indices = @transform_8, window_bounds = array<i64: 1, 16, 128>}]} {
    %c0 = arith.constant 0 : index
    %c0_0 = arith.constant 0 : index
    %c0_1 = arith.constant 0 : index
    %0 = vector.load %arg2[%c0, %c0_0, %c0_1] : memref<1x16x128xf32, #tpu.memory_space<vmem>>, vector<1x16x128xf32>
    %1 = vector.shape_cast %0 : vector<1x16x128xf32> to vector<16x128xf32>
    %c128_i32 = arith.constant 128 : i32
    %2 = arith.muli %arg1, %c128_i32 : i32
    %c300_i32 = arith.constant 300 : i32
    %3 = arith.subi %c300_i32, %2 : i32
    %4 = tpu.iota {dimensions = array<i32: 1>} : vector<1x128xi32>
    %5 = vector.broadcast %3 : i32 to vector<1x128xi32>
    %6 = arith.cmpi slt, %4, %5 : vector<1x128xi32>
    %cst = arith.constant 0.000000e+00 : f32
    %7 = vector.shape_cast %6 : vector<1x128xi1> to vector<1x128xi1>
    %8 = vector.broadcast %7 : vector<1x128xi1> to vector<16x128xi1>
    %9 = vector.broadcast %cst : f32 to vector<16x128xf32>
    %10 = arith.select %8, %1, %9 : vector<16x128xi1>, vector<16x128xf32>
    %c0_2 = arith.constant 0 : index
    %c0_3 = arith.constant 0 : index
    %11 = vector.load %arg5[%c0_2, %c0_3] : memref<16x1xf32, #tpu.memory_space<vmem>>, vector<16x1xf32>
    %cst_4 = arith.constant 9.99999971E-10 : f32
    %12 = vector.broadcast %cst_4 : f32 to vector<16x1xf32>
    %13 = arith.addf %11, %12 : vector<16x1xf32>
    %cst_5 = arith.constant 1.000000e+00 : f32
    %14 = vector.broadcast %cst_5 : f32 to vector<16x1xf32>
    %15 = arith.divf %14, %13 : vector<16x1xf32>
    %c0_6 = arith.constant 0 : index
    %c0_7 = arith.constant 0 : index
    %16 = vector.load %arg8[%c0_6, %c0_7] : memref<16x1xf32, #tpu.memory_space<vmem>>, vector<16x1xf32>
    %cst_8 = arith.constant 9.99999971E-10 : f32
    %17 = vector.broadcast %cst_8 : f32 to vector<16x1xf32>
    %18 = arith.addf %16, %17 : vector<16x1xf32>
    %cst_9 = arith.constant 1.000000e+00 : f32
    %19 = vector.broadcast %cst_9 : f32 to vector<16x1xf32>
    %20 = arith.divf %19, %18 : vector<16x1xf32>
    %21 = vector.broadcast %11 : vector<16x1xf32> to vector<16x128xf32>
    %22 = arith.mulf %21, %10 : vector<16x128xf32>
    %23 = math.sin %22 : vector<16x128xf32>
    %24 = arith.mulf %23, %23 : vector<16x128xf32>
    %25 = vector.broadcast %15 : vector<16x1xf32> to vector<16x128xf32>
    %26 = arith.mulf %25, %24 : vector<16x128xf32>
    %27 = arith.addf %10, %26 : vector<16x128xf32>
    %28 = arith.truncf %27 : vector<16x128xf32> to vector<16x128xbf16>
    %c0_10 = arith.constant 0 : index
    %c0_11 = arith.constant 0 : index
    %c0_12 = arith.constant 0 : index
    %c0_13 = arith.constant 0 : index
    %29 = vector.load %arg3[%c0_10, %c0_11, %c0_12, %c0_13] : memref<1x1x16x128xf32, #tpu.memory_space<vmem>>, vector<1x1x16x128xf32>
    %30 = vector.shape_cast %29 : vector<1x1x16x128xf32> to vector<16x128xf32>
    %31 = vector.broadcast %11 : vector<16x1xf32> to vector<16x128xf32>
    %32 = arith.mulf %31, %30 : vector<16x128xf32>
    %33 = math.sin %32 : vector<16x128xf32>
    %34 = arith.mulf %33, %33 : vector<16x128xf32>
    %35 = vector.broadcast %15 : vector<16x1xf32> to vector<16x128xf32>
    %36 = arith.mulf %35, %34 : vector<16x128xf32>
    %37 = arith.addf %30, %36 : vector<16x128xf32>
    %38 = arith.truncf %37 : vector<16x128xf32> to vector<16x128xbf16>
    %39 = vector.extract_strided_slice %38 {offsets = [0, 0], sizes = [16, 3], strides = [1, 1]} : vector<16x128xbf16> to vector<16x3xbf16>
    %40 = vector.extract_strided_slice %38 {offsets = [0, 3], sizes = [16, 3], strides = [1, 1]} : vector<16x128xbf16> to vector<16x3xbf16>
    %41 = tpu.concatenate %39, %28, %40 in 1 : vector<16x3xbf16>, vector<16x128xbf16>, vector<16x3xbf16> -> vector<16x134xbf16>
    %c0_14 = arith.constant 0 : index
    %c0_15 = arith.constant 0 : index
    %c0_16 = arith.constant 0 : index
    %42 = vector.load %arg4[%c0_14, %c0_15, %c0_16] : memref<7x16x16xbf16, #tpu.memory_space<vmem>>, vector<1x16x16xbf16>
    %43 = vector.shape_cast %42 : vector<1x16x16xbf16> to vector<16x16xbf16>
    %44 = vector.extract_strided_slice %41 {offsets = [0, 0], sizes = [16, 128], strides = [1, 1]} : vector<16x134xbf16> to vector<16x128xbf16>
    %cst_17 = arith.constant dense<0.000000e+00> : vector<16x128xf32>
    %45 = tpu.matmul %43, %44, %cst_17 {dimension_numbers = #tpu.dot_dimension_numbers<[1], [0], [0], [1], [0, 0, 1, 1], [], []>} : vector<16x16xbf16>, vector<16x128xbf16>, vector<16x128xf32> -> vector<16x128xf32>
    %c1 = arith.constant 1 : index
    %c0_18 = arith.constant 0 : index
    %c0_19 = arith.constant 0 : index
    %46 = vector.load %arg4[%c1, %c0_18, %c0_19] : memref<7x16x16xbf16, #tpu.memory_space<vmem>>, vector<1x16x16xbf16>
    %47 = vector.shape_cast %46 : vector<1x16x16xbf16> to vector<16x16xbf16>
    %48 = vector.extract_strided_slice %41 {offsets = [0, 1], sizes = [16, 128], strides = [1, 1]} : vector<16x134xbf16> to vector<16x128xbf16>
    %cst_20 = arith.constant dense<0.000000e+00> : vector<16x128xf32>
    %49 = tpu.matmul %47, %48, %cst_20 {dimension_numbers = #tpu.dot_dimension_numbers<[1], [0], [0], [1], [0, 0, 1, 1], [], []>} : vector<16x16xbf16>, vector<16x128xbf16>, vector<16x128xf32> -> vector<16x128xf32>
    %50 = arith.addf %45, %49 : vector<16x128xf32>
    %c2 = arith.constant 2 : index
    %c0_21 = arith.constant 0 : index
    %c0_22 = arith.constant 0 : index
    %51 = vector.load %arg4[%c2, %c0_21, %c0_22] : memref<7x16x16xbf16, #tpu.memory_space<vmem>>, vector<1x16x16xbf16>
    %52 = vector.shape_cast %51 : vector<1x16x16xbf16> to vector<16x16xbf16>
    %53 = vector.extract_strided_slice %41 {offsets = [0, 2], sizes = [16, 128], strides = [1, 1]} : vector<16x134xbf16> to vector<16x128xbf16>
    %cst_23 = arith.constant dense<0.000000e+00> : vector<16x128xf32>
    %54 = tpu.matmul %52, %53, %cst_23 {dimension_numbers = #tpu.dot_dimension_numbers<[1], [0], [0], [1], [0, 0, 1, 1], [], []>} : vector<16x16xbf16>, vector<16x128xbf16>, vector<16x128xf32> -> vector<16x128xf32>
    %55 = arith.addf %50, %54 : vector<16x128xf32>
    %c3 = arith.constant 3 : index
    %c0_24 = arith.constant 0 : index
    %c0_25 = arith.constant 0 : index
    %56 = vector.load %arg4[%c3, %c0_24, %c0_25] : memref<7x16x16xbf16, #tpu.memory_space<vmem>>, vector<1x16x16xbf16>
    %57 = vector.shape_cast %56 : vector<1x16x16xbf16> to vector<16x16xbf16>
    %58 = vector.extract_strided_slice %41 {offsets = [0, 3], sizes = [16, 128], strides = [1, 1]} : vector<16x134xbf16> to vector<16x128xbf16>
    %cst_26 = arith.constant dense<0.000000e+00> : vector<16x128xf32>
    %59 = tpu.matmul %57, %58, %cst_26 {dimension_numbers = #tpu.dot_dimension_numbers<[1], [0], [0], [1], [0, 0, 1, 1], [], []>} : vector<16x16xbf16>, vector<16x128xbf16>, vector<16x128xf32> -> vector<16x128xf32>
    %60 = arith.addf %55, %59 : vector<16x128xf32>
    %c4 = arith.constant 4 : index
    %c0_27 = arith.constant 0 : index
    %c0_28 = arith.constant 0 : index
    %61 = vector.load %arg4[%c4, %c0_27, %c0_28] : memref<7x16x16xbf16, #tpu.memory_space<vmem>>, vector<1x16x16xbf16>
    %62 = vector.shape_cast %61 : vector<1x16x16xbf16> to vector<16x16xbf16>
    %63 = vector.extract_strided_slice %41 {offsets = [0, 4], sizes = [16, 128], strides = [1, 1]} : vector<16x134xbf16> to vector<16x128xbf16>
    %cst_29 = arith.constant dense<0.000000e+00> : vector<16x128xf32>
    %64 = tpu.matmul %62, %63, %cst_29 {dimension_numbers = #tpu.dot_dimension_numbers<[1], [0], [0], [1], [0, 0, 1, 1], [], []>} : vector<16x16xbf16>, vector<16x128xbf16>, vector<16x128xf32> -> vector<16x128xf32>
    %65 = arith.addf %60, %64 : vector<16x128xf32>
    %c5 = arith.constant 5 : index
    %c0_30 = arith.constant 0 : index
    %c0_31 = arith.constant 0 : index
    %66 = vector.load %arg4[%c5, %c0_30, %c0_31] : memref<7x16x16xbf16, #tpu.memory_space<vmem>>, vector<1x16x16xbf16>
    %67 = vector.shape_cast %66 : vector<1x16x16xbf16> to vector<16x16xbf16>
    %68 = vector.extract_strided_slice %41 {offsets = [0, 5], sizes = [16, 128], strides = [1, 1]} : vector<16x134xbf16> to vector<16x128xbf16>
    %cst_32 = arith.constant dense<0.000000e+00> : vector<16x128xf32>
    %69 = tpu.matmul %67, %68, %cst_32 {dimension_numbers = #tpu.dot_dimension_numbers<[1], [0], [0], [1], [0, 0, 1, 1], [], []>} : vector<16x16xbf16>, vector<16x128xbf16>, vector<16x128xf32> -> vector<16x128xf32>
    %70 = arith.addf %65, %69 : vector<16x128xf32>
    %c6 = arith.constant 6 : index
    %c0_33 = arith.constant 0 : index
    %c0_34 = arith.constant 0 : index
    %71 = vector.load %arg4[%c6, %c0_33, %c0_34] : memref<7x16x16xbf16, #tpu.memory_space<vmem>>, vector<1x16x16xbf16>
    %72 = vector.shape_cast %71 : vector<1x16x16xbf16> to vector<16x16xbf16>
    %73 = vector.extract_strided_slice %41 {offsets = [0, 6], sizes = [16, 128], strides = [1, 1]} : vector<16x134xbf16> to vector<16x128xbf16>
    %cst_35 = arith.constant dense<0.000000e+00> : vector<16x128xf32>
    %74 = tpu.matmul %72, %73, %cst_35 {dimension_numbers = #tpu.dot_dimension_numbers<[1], [0], [0], [1], [0, 0, 1, 1], [], []>} : vector<16x16xbf16>, vector<16x128xbf16>, vector<16x128xf32> -> vector<16x128xf32>
    %75 = arith.addf %70, %74 : vector<16x128xf32>
    %c0_36 = arith.constant 0 : index
    %c0_37 = arith.constant 0 : index
    %76 = vector.load %arg6[%c0_36, %c0_37] : memref<16x1xf32, #tpu.memory_space<vmem>>, vector<16x1xf32>
    %77 = vector.broadcast %76 : vector<16x1xf32> to vector<16x128xf32>
    %78 = arith.addf %75, %77 : vector<16x128xf32>
    %79 = vector.broadcast %16 : vector<16x1xf32> to vector<16x128xf32>
    %80 = arith.mulf %79, %78 : vector<16x128xf32>
    %81 = math.sin %80 : vector<16x128xf32>
    %82 = arith.mulf %81, %81 : vector<16x128xf32>
    %83 = vector.broadcast %20 : vector<16x1xf32> to vector<16x128xf32>
    %84 = arith.mulf %83, %82 : vector<16x128xf32>
    %85 = arith.addf %78, %84 : vector<16x128xf32>
    %86 = arith.truncf %85 : vector<16x128xf32> to vector<16x128xbf16>
    %c0_38 = arith.constant 0 : index
    %c0_39 = arith.constant 0 : index
    %87 = vector.load %arg7[%c0_38, %c0_39] : memref<16x16xbf16, #tpu.memory_space<vmem>>, vector<16x16xbf16>
    %cst_40 = arith.constant dense<0.000000e+00> : vector<16x128xf32>
    %88 = tpu.matmul %87, %86, %cst_40 {dimension_numbers = #tpu.dot_dimension_numbers<[1], [0], [0], [1], [0, 0, 1, 1], [], []>} : vector<16x16xbf16>, vector<16x128xbf16>, vector<16x128xf32> -> vector<16x128xf32>
    %c0_41 = arith.constant 0 : index
    %c0_42 = arith.constant 0 : index
    %89 = vector.load %arg9[%c0_41, %c0_42] : memref<16x1xf32, #tpu.memory_space<vmem>>, vector<16x1xf32>
    %90 = vector.broadcast %89 : vector<16x1xf32> to vector<16x128xf32>
    %91 = arith.addf %88, %90 : vector<16x128xf32>
    %92 = arith.addf %10, %91 : vector<16x128xf32>
    %c0_43 = arith.constant 0 : index
    %c0_44 = arith.constant 0 : index
    %c0_45 = arith.constant 0 : index
    %93 = vector.load %arg10[%c0_43, %c0_44, %c0_45] : memref<1x16x128xf32, #tpu.memory_space<vmem>>, vector<1x16x128xf32>
    %94 = vector.shape_cast %93 : vector<1x16x128xf32> to vector<16x128xf32>
    %95 = vector.shape_cast %92 : vector<16x128xf32> to vector<1x16x128xf32>
    tpu.vector_store %arg10[%c0_43, %c0_44, %c0_45], %95 {strides = array<i32>} : memref<1x16x128xf32, #tpu.memory_space<vmem>>, vector<1x16x128xf32>,
    return
  }
  func.func @transform_0(%arg0: i32, %arg1: i32) -> (i32, i32, i32) {
    %c0_i32 = arith.constant 0 : i32
    %c0_i32_0 = arith.constant 0 : i32
    return %arg0, %c0_i32, %arg1 : i32, i32, i32
  }
  func.func @transform_1(%arg0: i32, %arg1: i32) -> (i32, i32, i32, i32) {
    %c0_i32 = arith.constant 0 : i32
    %c0_i32_0 = arith.constant 0 : i32
    %c0_i32_1 = arith.constant 0 : i32
    return %arg0, %arg1, %c0_i32, %c0_i32_0 : i32, i32, i32, i32
  }
  func.func @transform_2(%arg0: i32, %arg1: i32) -> (i32, i32, i32) {
    %c0_i32 = arith.constant 0 : i32
    %c0_i32_0 = arith.constant 0 : i32
    %c0_i32_1 = arith.constant 0 : i32
    %c0_i32_2 = arith.constant 0 : i32
    return %c0_i32, %c0_i32_0, %c0_i32_1 : i32, i32, i32
  }
  func.func @transform_3(%arg0: i32, %arg1: i32) -> (i32, i32) {
    %c0_i32 = arith.constant 0 : i32
    %c0_i32_0 = arith.constant 0 : i32
    %c0_i32_1 = arith.constant 0 : i32
    return %c0_i32, %c0_i32_0 : i32, i32
  }
  func.func @transform_4(%arg0: i32, %arg1: i32) -> (i32, i32) {
    %c0_i32 = arith.constant 0 : i32
    %c0_i32_0 = arith.constant 0 : i32
    %c0_i32_1 = arith.constant 0 : i32
    return %c0_i32, %c0_i32_0 : i32, i32
  }
  func.func @transform_5(%arg0: i32, %arg1: i32) -> (i32, i32) {
    %c0_i32 = arith.constant 0 : i32
    %c0_i32_0 = arith.constant 0 : i32
    %c0_i32_1 = arith.constant 0 : i32
    return %c0_i32, %c0_i32_0 : i32, i32
  }
  func.func @transform_6(%arg0: i32, %arg1: i32) -> (i32, i32) {
    %c0_i32 = arith.constant 0 : i32
    %c0_i32_0 = arith.constant 0 : i32
    %c0_i32_1 = arith.constant 0 : i32
    return %c0_i32, %c0_i32_0 : i32, i32
  }
  func.func @transform_7(%arg0: i32, %arg1: i32) -> (i32, i32) {
    %c0_i32 = arith.constant 0 : i32
    %c0_i32_0 = arith.constant 0 : i32
    %c0_i32_1 = arith.constant 0 : i32
    return %c0_i32, %c0_i32_0 : i32, i32
  }
  func.func @transform_8(%arg0: i32, %arg1: i32) -> (i32, i32, i32) {
    %c0_i32 = arith.constant 0 : i32
    %c0_i32_0 = arith.constant 0 : i32
    return %arg0, %c0_i32, %arg1 : i32, i32, i32
  }
}

</mosaic_0001>

<bundles_post_ra>
// kernel: tpu_custom_call.1
= control target key start
LH: loop header
LB: loop body
LE: loop exit
PB: predicated region body
PF: predicated region fallthrough
CT: control target
= control target key end

     0   :  { %s3461_s0 = inlined_call_operand.hbm [shape: f32[2,16,300], index: 0, kind: input, shape index: {}]   ;;  %s3462_s1 = inlined_call_operand.hbm [shape: f32[2,3,16,128], index: 1, kind: input, shape index: {}]   ;;  %s3463_s2 = inlined_call_operand.vmem [shape: bf16[7,16,16], index: 2, kind: input, shape index: {}]   ;;  %s3464_s3 = inlined_call_operand.vmem [shape: f32[16,1], index: 3, kind: input, shape index: {}]   ;;  %s3465_s4 = inlined_call_operand.vmem [shape: f32[16,1], index: 4, kind: input, shape index: {}]   ;;  %s3466_s5 = inlined_call_operand.vmem [shape: bf16[16,16], index: 5, kind: input, shape index: {}]   ;;  %s3467_s6 = inlined_call_operand.vmem [shape: f32[16,1], index: 6, kind: input, shape index: {}]   ;;  %s3468_s7 = inlined_call_operand.vmem [shape: f32[16,1], index: 7, kind: input, shape index: {}]   ;;  %s3469_s8 = inlined_call_operand.hbm [shape: f32[2,16,300], index: 8, kind: output, shape index: {}]  }
   0x1   :  { %3508 = sst [smem:[#allocation25_spill]] %s3461_s0 }
   0x2   :  { %3509 = sst [smem:[#allocation26_spill]] %s3466_s5 }
   0x3   :  { %3510 = sst [smem:[#allocation27_spill]] %s3469_s8 }
   0x4   :  { %13 = vsyncpa [#allocation3], 0 }
   0x5   :  { %15 = vsyncpa [#allocation3 + $0x1], 0 }
   0x6   :  { %16 = vsyncpa [#allocation6], 0 }
   0x7   :  { %18 = vsyncpa [#allocation6 + $0x1], 0 }
   0x8   :  { %19 = vsyncpa [#allocation4], 0 }
   0x9   :  { %21 = vsyncpa [#allocation4 + $0x1], 0  ;;  %s2347_s27 = smov 0   ;;  %s2349_s28 = smov 0  }
   0xa   :  { %s2351_s29 = smov 0   ;;  %s2353_s30 = smov 0  }
   0xb   :  { %s2355_s9 = smov 0   ;;  %s2357_s10 = smov 0  }
   0xc   :  { %s2359_s11 = smov 0   ;;  %s2361_s12 = smov 0  }
   0xd LB: > { %3511 = sst [smem:[#allocation11_spill]] %s2252_s27  ;;  %s1903_s13 = sadd.s32 4294967295, %s2280_s12   ;;  %s2280_s12 = sphi %s2361_s12, %s27_s12   ;;  %s2276_s11 = sphi %s2359_s11, %s3584_s11   ;;  %s2272_s10 = sphi %s2357_s10, %s3588_s10   ;;  %s2268_s9 = sphi %s2355_s9, %s3582_s9   ;;  %s2264_s30 = sphi %s2353_s30, %s3587_s30   ;;  %s2260_s29 = sphi %s2351_s29, %s3581_s29   ;;  %s2256_s28 = sphi %s2349_s28, %s3586_s28   ;;  %s2252_s27 = sphi %s2347_s27, %s3585_s27  }
   0xe   : > { %3512 = sst [smem:[#allocation12_spill]] %s2260_s29  ;;  %s1904_s14 = sadd.s32 4294967294, %s2280_s12  }
   0xf   : > { %3513 = sst [smem:[#allocation13_spill]] %s2268_s9  ;;  %s36_s15 = sadd.s32 1, %s2272_s10 }
  0x10   : > { %3514 = sst [smem:[#allocation14_spill]] %s2276_s11  ;;  %s39_s16 = sadd.s32 1, %s2276_s11 }
  0x11   : > { %p37_p0 = scmp.ge.s32.totalorder %s36_s15, 3  ;;  %s48_s17 = sadd.s32 1, %s2260_s29 }
  0x12   : > { %p55_p1 = scmp.ne.s32.totalorder %s2260_s29, %s2256_s28  ;;  %p56_p2 = scmp.eq.s32.totalorder %s2280_s12, 0 }
  0x13   : > { %s3590_s15 = smov (%p37_p0, %s36_s15), 0  ;;  %s3592_s16 = smov (!%p37_p0, %s39_s16), %s2276_s11 }
  0x14   : > { %3515 = sst [smem:[#allocation15_spill]] %s3590_s15  ;;  %s44_s18 = ssub.s32 %s2272_s10, %s3590_s15 }
  0x15   : > { %p2400_p3 = por %p56_p2, %p55_p1  ;;  %p41_p4 = scmp.ge.s32.totalorder %s3592_s16, 2 }
  0x16   : > { %p61_p5 = scmp.ne.s32.totalorder %s2256_s28, %s2252_s27  ;;  %p62_p6 = scmp.eq.s32.totalorder %s1903_s13, 0 }
  0x17   : > { %p241_p7 = scmp.eq.s32.totalorder %s1903_s13, 5  ;;  %s3594_s16 = smov (%p41_p4, %s3592_s16), 0 }
  0x18   : > { %3517 = sst [smem:[#allocation16_spill]] %s3594_s16  ;;  %p2408_p8 = por %p62_p6, %p61_p5 }
  0x19   : > { %p2412_p9 = por %p241_p7, %p55_p1  ;;  %s43_s22 = ssub.s32 %s2276_s11, %s3594_s16 }
  0x1a   : > { %p247_p10 = scmp.eq.s32.totalorder %s1904_s14, 5  ;;  %s45_s23 = sor.u32 %s44_s18, %s43_s22 }
  0x1b   : > { %s3519_s21 = scalar_select %p2412_p9, 1, 0 }
  0x1c   : > { %p46_p11 = scmp.eq.s32.totalorder %s45_s23, 0  ;;  %p2418_p12 = por %p247_p10, %p61_p5 }
  0x1d   : > { %3520 = sst [smem:[#allocation17_spill]] %s3519_s21  ;;  %p2019_p13 = scmp.lt.s32.totalorder %s2280_s12, 6 }
  0x1e   : > { %s3521_s24 = scalar_select %p2418_p12, 1, 0 }
  0x1f   : > { %s2424_s25 = sand.u32 1, %s2260_s29   ;;  %s1999_s15 = smul.u32 6, %s2276_s11 }
  0x20   : > { %3522 = sst [smem:[#allocation18_spill]] %s3521_s24  ;;  %s1907_s13 = sshll.u32 %s2424_s25, 4 }
  0x21   : > { %s2427_s26 = scalar_select %p46_p11, %s2260_s29, %s48_s17  }
  0x22   : > { %s289_s27 = scalar_lea.vmem [#allocation2], %s1907_s13  ;;  %p2433_p0 = pnand %p2019_p13, %p2400_p3 }
  0x23   : > { %3523 = sst [smem:[#allocation19_spill]] %s2427_s26  ;;  %s298_s16 = sshll.u32 %s289_s27, 4  ;;  %s299_s16 = int_to_ptr.vmem [resolvable:$true] %s298_s16 }
  0x24   : > { %s293_s18 = sadd.s32 %s2272_s10, %s1999_s15  ;;  %s3525_s0 = sld [smem:[#allocation25_spill]] }
  0x25   : > { %s1908_s22 = sshll.u32 %s293_s18, 3  ;;  %s286_s11 = scalar_lea.sflag [#allocation3], %s2424_s25 }
  0x26   : > { %s2282_s29 = smov 384   ;;  %s2283_s27 = smov 128  }
  0x27   : > { %s2284_s19 = smov 8   ;;  %p1912_p1 = scmp.ge.s32.totalorder %s2280_s12, 1 }
  0x28   : > { %p330_p2 = scmp.lt.s32.totalorder %s2280_s12, 7  ;;  %s1910_s21 = sshll.u32 %s2272_s10, 1 }
  0x29   : > { %s317_s8 = sadd.s32 %s1999_s15, %s1910_s21  ;;  %s312_s18 = scalar_lea.vmem [#allocation5], %s1907_s13 }
  0x2a   : > { %s295_s17 = scalar_lea.hbm %s3525_s0, %s1908_s22  ;;  %p331_p3 = pnand %p1912_p1, %p330_p2 }
  0x2b   : > { %s296_s26 = sshll.u32 %s295_s17, 4  ;;  %s322_s5 = sshll.u32 %s312_s18, 4  ;;  %s297_s26 = int_to_ptr.hbm [resolvable:$true] %s296_s26  ;;  %s323_s5 = int_to_ptr.vmem [resolvable:$true] %s322_s5 }
  0x2c   : > { %2011 = dma.hbm_to_vmem [thread:$0]  (!%p2433_p0), %s297_s26, 256, %s299_s16, %s286_s11, %s2282_s29, %s2283_s27, %s2284_s19  }
  0x2d   : > { %s1911_s9 = sshll.u32 %s317_s8, 3  ;;  %s309_s0 = scalar_lea.sflag [#allocation6], %s2424_s25 }
  0x2e   : > { %s319_s23 = scalar_lea.hbm %s3462_s1, %s1911_s9  ;;  %334 = sbr.rel (%p331_p3) target bundleno = 981 (0x3d5), region = 52 }
  0x2f   : > { %s320_s17 = sshll.u32 %s319_s23, 4  ;;  %s321_s17 = int_to_ptr.hbm [resolvable:$true] %s320_s17 }
  0x30   : > { %2014 = dma.hbm_to_vmem [thread:$0]  (!%p2433_p0), %s321_s17, 256, %s323_s5, %s309_s0, %s2283_s27, %s2283_s27, %s2284_s19  }
  0x33   : > { %s2454_s29 = sand.u32 1, %s2256_s28  }
  0x34   : > { %s2457_s11 = sshll.u32 %s2454_s29, 4  ;;  %s337_s8 = scalar_lea.sflag [#allocation3], %s2454_s29 }
  0x35   : > { %s340_s15 = scalar_lea.vmem [#allocation2], %s2457_s11 }
  0x36   : > { %2239 = dma.done.wait (%p2408_p8), %s337_s8, 256  }
  0x37   : > { %2241 = vsyncadd (%p2408_p8), %s337_s8, 4294967040  ;;  %s347_s0 = scalar_lea.sflag [#allocation6], %s2454_s29  ;;  %s2467_s5 = scalar_lea.vmem [#allocation5], %s2457_s11 }
  0x38   : > { %2243 = dma.done.wait (%p2408_p8), %s347_s0, 256  }
  0x39   : > { %2245 = vsyncadd (%p2408_p8), %s347_s0, 4294967040  ;;  %v3485_v0 = vmov 0   ;;  %v402_v1 = vld [vmem:[%s3464_s3] sm:$0xff]  ;;  %v403_v2 = vld [vmem:[%s3464_s3 + $0x8] sm:$0xff]  ;;  %s1916_s20 = sshll.u32 %s2264_s30, 7  ;;  %v394_v25 = vlaneseq  ;;  %s2292_s13 = smov 3  }
  0x3a   : > { %2105 = vset.pattern.permute.xlu0 %v3485_v0  ;;  %2106 = vset.pattern.permute.xlu1 %v3485_v0  ;;  %v404_v3 = vadd.f32 1e-09, %v402_v1  ;;  %v405_v4 = vadd.f32 1e-09, %v403_v2  ;;  %s393_s26 = ssub.s32 300, %s1916_s20  ;;  %v390_v29 = vld [vmem:[%s340_s15] sm:$0xff] }
  0x3b   : > { %2107 = vset.pattern.permute.xlu2 %v3485_v0  ;;  %472 = vperm.xlu0 %2105, %v402_v1   ;;  %v395_v26 = vand.u32 127, %v394_v25  ;;  %v396_v27 = vstv %s393_s26  ;;  %v810_v34 = vld [vmem:[%s2467_s5] sm:$0xff]  ;;  %v391_v45 = vld [vmem:[%s340_s15 + $0x8] sm:$0xff]  ;;  %v3482_v51 = vmov 1326507024   ;;  %s2293_s14 = smov 126  }
  0x3c   : > { %2108 = vrcp.f32 %v404_v3  ;;  %v417_v8 = vand.u32 2147483648, %v404_v3  ;;  %vm411_vm0 = vweird.f32 %v404_v3  ;;  %v415_v11 = vand.u32 2147483647, %v404_v3  ;;  %s2294_s27 = smov 127   ;;  %s2295_s23 = smov 125  }
  0x3d   : > { %2110 = vrcp.f32 %v405_v4  ;;  %vm426_vm4 = vweird.f32 %v405_v4  ;;  %v432_v17 = vand.u32 2147483648, %v405_v4  ;;  %v430_v20 = vand.u32 2147483647, %v405_v4  ;;  %s2296_s17 = smov 122   ;;  %s2297_s8 = smov 124  }
  0x3e   : > { %v418_v14 = vor.u32 1.1754944e-38, %v417_v8  ;;  %vm416_vm3 = vcmp.eq.f32.partialorder %v415_v11, 8.507059e+37  ;;  %vm2483_vm8 = vcmp.lt.s32.totalorder %v395_v26, %v396_v27  ;;  %v3491_v55 = vmov 2131351028   ;;  %s2298_s15 = smov 123   ;;  %s3574_s16 = sld [smem:[#allocation13_spill]] }
  0x3f   : > { %v433_v22 = vor.u32 1.1754944e-38, %v432_v17  ;;  %vm431_vm7 = vcmp.eq.f32.partialorder %v430_v20, 8.507059e+37  ;;  %v2491_v31 = vsel %vm2483_vm8, %v390_v29, 0.0  ;;  %v2507_v48 = vsel %vm2483_vm8, %v391_v45, 0.0  ;;  %s3575_s20 = sld [smem:[#allocation26_spill]] }
  0x40   : > { %3528 = vst [vmem:[#allocation20_spill] sm:$0xff] %v2491_v31  ;;  %v3489_v57 = vmov 920167782   ;;  %v3487_v59 = vmov 2102212464   ;;  %s3576_s24 = sld [smem:[#allocation27_spill]] }
  0x41   : > { %3530 = vst [vmem:[#allocation22_spill] sm:$0xff] %v2507_v48  ;;  %v3495_v28 = vmov 683565275  }
  0x42   : > { %v2109_v5 = vpop.eup %2108 }
  0x43   : > { %477 = vperm.xlu0 %2105, %v403_v2   ;;  %v2111_v6 = vpop.eup %2110  ;;  %v407_v7 = vmul.f32 %v2109_v5, %v404_v3  ;;  %vm412_vm1 = vweird.f32 %v2109_v5  ;;  %v3493_v2 = vmov 2475754826  }
  0x44   : > { %v422_v9 = vmul.f32 %v2111_v6, %v405_v4  ;;  %vm413_vm2 = vmor %vm411_vm0, %vm412_vm1  ;;  %vm427_vm5 = vweird.f32 %v2111_v6  ;;  %s2001_s26 = smul.u32 6, %s3574_s16 }
  0x45   : > { %v408_v10 = vsub.f32 1.0, %v407_v7  ;;  %vm428_vm6 = vmor %vm426_vm4, %vm427_vm5 }
  0x46   : > { %v423_v12 = vsub.f32 1.0, %v422_v9  ;;  %s2198_s9 = scalar_lea.hbm %s3576_s24, 96 }
  0x47   : > { %v409_v13 = vmul.f32 %v2109_v5, %v408_v10 }
  0x48   : > { %v424_v15 = vmul.f32 %v2111_v6, %v423_v12 }
  0x49   : > { %v410_v16 = vadd.f32 %v2109_v5, %v409_v13 }
  0x4a   : > { %v425_v19 = vadd.f32 %v2111_v6, %v424_v15  ;;  %v811_v15 = vld [vmem:[%s2467_s5 + $0x8] sm:$0xff] }
  0x4b   : > { %v414_v18 = vsel %vm413_vm2, %v2109_v5, %v410_v16 }
  0x4c   : > { %v419_v21 = vsel %vm416_vm3, %v418_v14, %v414_v18  ;;  %v429_v23 = vsel %vm428_vm6, %v2111_v6, %v425_v19 }
  0x4d   : > { %796 = vperm.xlu1 %2106, %v419_v21   ;;  %v434_v24 = vsel %vm431_vm7, %v433_v22, %v429_v23 }
  0x55   : > { %801 = vperm.xlu1 %2106, %v434_v24  }
  0xad   : > { %v473_v30 = vpop.permute.xlu0 %472 }
  0xae   : > { %v2494_v32 = vmul.f32 %v473_v30, %v2491_v31  ;;  %v2498_v36 = vmul.f32 %v810_v34, %v473_v30 }
  0xb0   : > { %v485_v33 = vand.u32 2139095040, %v2494_v32  ;;  %3529 = vst [vmem:[#allocation21_spill] sm:$0xff] %v2498_v36  ;;  %v817_v38 = vand.u32 2139095040, %v2498_v36  ;;  %v3481_v50 = vand.u32 2147483647, %v2494_v32 }
  0xb1   : > { %v3479_v8 = vand.u32 2147483647, %v2498_v36 }
  0xb2   : > { %v486_v35 = vshrl.u32 %v485_v33, 23  ;;  %v818_v40 = vshrl.u32 %v817_v38, 23  ;;  %v489_v1 = vand.u32 8388607, %v3481_v50 }
  0xb3   : > { %v821_v16 = vand.u32 8388607, %v3479_v8 }
  0xb4   : > { %v1917_v37 = vadd.s32 4294967169, %v486_v35  ;;  %v1923_v42 = vadd.s32 4294967169, %v818_v40  ;;  %v490_v13 = vor.u32 8388608, %v489_v1 }
  0xb5   : > { %v478_v47 = vpop.permute.xlu0 %477 }
  0xb6   : > { %v492_v39 = vadd.s32 1, %v1917_v37  ;;  %v824_v44 = vadd.s32 1, %v1923_v42  ;;  %v2510_v49 = vmul.f32 %v478_v47, %v2507_v48  ;;  %v2552_v22 = vshll.u32 %v490_v13, 8 }
  0xb7   : > { %v2556_v24 = vmul.f32 %v811_v15, %v478_v47 }
  0xb8   : > { %vm493_vm9 = vcmp.gt.s32.totalorder %v492_v39, 0  ;;  %vm825_vm10 = vcmp.gt.s32.totalorder %v824_v44, 0  ;;  %3531 = vst [vmem:[#allocation23_spill] sm:$0xff] %v2510_v49  ;;  %v640_v63 = vand.u32 2139095040, %v2510_v49 }
  0xb9   : > { %v494_v41 = vsel %vm493_vm9, %v492_v39, 0  ;;  %v826_v53 = vsel %vm825_vm10, %v824_v44, 0  ;;  %3532 = vst [vmem:[#allocation24_spill] sm:$0xff] %v2556_v24 }
  0xba   : > { %v496_v43 = vand.u32 31, %v494_v41  ;;  %v2515_v54 = vshrl.u32 %v494_v41, 5  ;;  %v828_v62 = vand.u32 31, %v826_v53  ;;  %v641_v12 = vshrl.u32 %v640_v63, 23 }
  0xbb   : > { %v2554_v23 = vshrl.u32 %v826_v53, 5  ;;  %v822_v41 = vor.u32 8388608, %v821_v16 }
  0xbc   : > { %v2503_v46 = vsub.s32 32, %v496_v43  ;;  %v511_v58 = vshll.u32 %v3489_v57, %v496_v43  ;;  %v502_v3 = vshll.u32 %v3493_v2, %v496_v43  ;;  %v505_v5 = vshll.u32 %v3491_v55, %v496_v43 }
  0xbd   : > { %v508_v6 = vshll.u32 %v3487_v59, %v496_v43  ;;  %vm517_vm11 = vcmp.lt.s32.totalorder %v2515_v54, 4  ;;  %v2534_v11 = vsub.s32 32, %v828_v62  ;;  %vm514_vm12 = vcmp.lt.s32.totalorder %v2515_v54, 1 }
  0xbe   : > { %v512_v52 = vshrl.u32 %v3482_v51, %v2503_v46  ;;  %v503_v56 = vshrl.u32 %v3491_v55, %v2503_v46  ;;  %v506_v60 = vshrl.u32 %v3487_v59, %v2503_v46  ;;  %v509_v61 = vshrl.u32 %v3489_v57, %v2503_v46 }
  0xbf   : > { %vm516_vm13 = vcmp.lt.s32.totalorder %v2515_v54, 3  ;;  %v841_v19 = vshrl.u32 %v3489_v57, %v2534_v11  ;;  %v1920_v20 = vadd.s32 4294967169, %v641_v12  ;;  %v500_v21 = vshrl.u32 %v3493_v2, %v2503_v46 }
  0xc0   : > { %v513_v4 = vor.u32 %v512_v52, %v511_v58  ;;  %v2530_v7 = vor.u32 %v503_v56, %v502_v3  ;;  %v507_v9 = vor.u32 %v506_v60, %v505_v5  ;;  %v510_v10 = vor.u32 %v509_v61, %v508_v6 }
  0xc1   : > { %vm515_vm14 = vcmp.lt.s32.totalorder %v2515_v54, 2  ;;  %v832_v25 = vshrl.u32 %v3493_v2, %v2534_v11  ;;  %v835_v26 = vshrl.u32 %v3491_v55, %v2534_v11  ;;  %v840_v27 = vshll.u32 %v3487_v59, %v828_v62 }
  0xc2   : > { %v527_v14 = vsel %vm517_vm11, %v513_v4, 1326507024  ;;  %v526_v17 = vsel %vm514_vm12, %v2530_v7, %v507_v9  ;;  %v499_v29 = vshll.u32 %v3495_v28, %v496_v43  ;;  %v838_v33 = vshrl.u32 %v3487_v59, %v2534_v11 }
  0xc3   : > { %v528_v18 = vsel %vm516_vm13, %v510_v10, %v527_v14  ;;  %v844_v34 = vshrl.u32 %v3482_v51, %v2534_v11  ;;  %v831_v35 = vshll.u32 %v3495_v28, %v828_v62  ;;  %v834_v37 = vshll.u32 %v3493_v2, %v828_v62 }
  0xc4   : > { %v2567_v30 = vsel %vm515_vm14, %v526_v17, %v528_v18  ;;  %v842_v38 = vor.u32 %v841_v19, %v840_v27  ;;  %v647_v39 = vadd.s32 1, %v1920_v20  ;;  %v501_v40 = vor.u32 %v500_v21, %v499_v29 }
  0xc5   : > { %v837_v42 = vshll.u32 %v3491_v55, %v828_v62  ;;  %v843_v43 = vshll.u32 %v3489_v57, %v828_v62  ;;  %v523_v44 = vsel %vm517_vm11, %v510_v10, 920167782  ;;  %v534_v45 = vshrl.u32 %v2567_v30, 16 }
  0xc6   : > { %v2580_v47 = vor.u32 %v832_v25, %v831_v35  ;;  %v2582_v52 = vor.u32 %v835_v26, %v834_v37  ;;  %vm849_vm15 = vcmp.lt.s32.totalorder %v2554_v23, 4  ;;  %v972_v58 = vand.u32 2139095040, %v2556_v24 }
  0xc7   : > { %v2584_v53 = vor.u32 %v838_v33, %v837_v42  ;;  %v845_v56 = vor.u32 %v844_v34, %v843_v43  ;;  %v2589_v60 = vand.u32 65535, %v2552_v22  ;;  %v855_v61 = vsel %vm849_vm15, %v842_v38, 920167782 }
  0xc8   : > { %v3480_v62 = vand.u32 2147483647, %v2510_v49  ;;  %vm648_vm0 = vcmp.gt.s32.totalorder %v647_v39, 0  ;;  %v519_v63 = vsel %vm517_vm11, %v507_v9, 2102212464  ;;  %v522_v1 = vsel %vm514_vm12, %v501_v40, %v2530_v7 }
  0xc9   : > { %v524_v3 = vsel %vm516_vm13, %v507_v9, %v523_v44  ;;  %vm846_vm1 = vcmp.lt.s32.totalorder %v2554_v23, 1  ;;  %v498_v4 = vshrl.u32 %v3495_v28, %v2503_v46  ;;  %v2605_v5 = vmul.u32 %v534_v45, %v2589_v60 }
  0xca   : > { %vm848_vm2 = vcmp.lt.s32.totalorder %v2554_v23, 3  ;;  %v854_v6 = vsel %vm846_vm1, %v2580_v47, %v2582_v52  ;;  %v859_v9 = vsel %vm849_vm15, %v845_v56, 1326507024  ;;  %v649_v12 = vsel %vm648_vm0, %v647_v39, 0 }
  0xcb   : > { %v856_v10 = vsel %vm848_vm2, %v2584_v53, %v855_v61  ;;  %v973_v13 = vshrl.u32 %v972_v58, 23  ;;  %v518_v46 = vsel %vm514_vm12, %v498_v4, %v501_v40  ;;  %v520_v14 = vsel %vm516_vm13, %v2530_v7, %v519_v63 }
  0xcc   : > { %v525_v15 = vsel %vm515_vm14, %v522_v1, %v524_v3  ;;  %v2624_v16 = vshll.u32 %v822_v41, 8  ;;  %v533_v17 = vand.u32 65535, %v2567_v30  ;;  %vm847_vm3 = vcmp.lt.s32.totalorder %v2554_v23, 2 }
  0xcd   : > { %v644_v18 = vand.u32 8388607, %v3480_v62  ;;  %v2632_v19 = vsel %vm847_vm3, %v854_v6, %v856_v10  ;;  %v858_v7 = vsel %vm846_vm1, %v2582_v52, %v2584_v53  ;;  %v860_v20 = vsel %vm848_vm2, %v842_v38, %v859_v9 }
  0xce   : > { %v2640_v21 = vand.u32 31, %v649_v12  ;;  %v2644_v25 = vsel %vm515_vm14, %v518_v46, %v520_v14  ;;  %v539_v26 = vshll.u32 %v2605_v5, 16  ;;  %v556_v27 = vshrl.u32 %v525_v15, 16 }
  0xcf   : > { %v1926_v29 = vadd.s32 4294967169, %v973_v13  ;;  %v532_v30 = vshrl.u32 %v2552_v22, 16  ;;  %v2649_v33 = vand.u32 65535, %v2624_v16  ;;  %v2652_v34 = vshrl.u32 %v2624_v16, 16 }
  0xd0   : > { %v535_v35 = vmul.u32 %v533_v17, %v2589_v60  ;;  %v2657_v37 = vsel %vm847_vm3, %v858_v7, %v860_v20  ;;  %v888_v54 = vshrl.u32 %v2632_v19, 16  ;;  %v645_v38 = vor.u32 8388608, %v644_v18 }
  0xd1   : > { %v538_v39 = vmul.u32 %v534_v45, %v532_v30  ;;  %v555_v40 = vand.u32 65535, %v525_v15  ;;  %v2663_v42 = vsub.s32 32, %v2640_v21  ;;  %v2670_v44 = vmul.u32 %v556_v27, %v2589_v60 }
  0xd2   : > { %vm2665_vm4 = vc.u32 %v535_v35, %v539_v26  ;;  %v560_v56 = vmul.u32 %v556_v27, %v532_v30  ;;  %v979_v58 = vadd.s32 1, %v1926_v29  ;;  %v545_v61 = vadd.s32 %v539_v26, %v535_v35 }
  0xd3   : > { %v865_v63 = vand.u32 65535, %v2657_v37  ;;  %v537_v1 = vmul.u32 %v533_v17, %v532_v30  ;;  %v866_v3 = vshrl.u32 %v2657_v37, 16  ;;  %v2676_v4 = vmul.u32 %v888_v54, %v2649_v33 }
  0xd4   : > { %v2678_v6 = vshrl.u32 %v649_v12, 5  ;;  %v2680_v10 = vshll.u32 %v645_v38, 8  ;;  %v657_v9 = vshll.u32 %v3493_v2, %v2640_v21  ;;  %v660_v13 = vshll.u32 %v3491_v55, %v2640_v21 }
  0xd5   : > { %v667_v46 = vshrl.u32 %v3482_v51, %v2663_v42  ;;  %v541_v14 = vshll.u32 %v537_v1, 16  ;;  %v658_v15 = vshrl.u32 %v3491_v55, %v2663_v42  ;;  %v666_v17 = vshll.u32 %v3489_v57, %v2640_v21 }
  0xd6   : > { %vm980_vm5 = vcmp.gt.s32.totalorder %v979_v58, 0  ;;  %v544_v12 = vsel %vm2665_vm4, 1, %v3485_v0  ;;  %v661_v18 = vshrl.u32 %v3487_v59, %v2663_v42  ;;  %v664_v7 = vshrl.u32 %v3489_v57, %v2663_v42 }
  0xd7   : > { %v546_v20 = vadd.s32 %v544_v12, %v538_v39  ;;  %vm547_vm6 = vc.u32 %v545_v61, %v541_v14  ;;  %v557_v27 = vmul.u32 %v555_v40, %v2589_v60  ;;  %v559_v29 = vmul.u32 %v555_v40, %v532_v30 }
  0xd8   : > { %v548_v26 = vsel %vm547_vm6, 1, %v3485_v0  ;;  %v561_v35 = vshll.u32 %v2670_v44, 16  ;;  %v663_v38 = vshll.u32 %v3487_v59, %v2640_v21  ;;  %v668_v43 = vor.u32 %v667_v46, %v666_v17 }
  0xd9   : > { %v981_v8 = vsel %vm980_vm5, %v979_v58, 0  ;;  %v550_v62 = vadd.s32 %v548_v26, %v546_v20  ;;  %v2704_v50 = vor.u32 %v658_v15, %v657_v9  ;;  %vm672_vm7 = vcmp.lt.s32.totalorder %v2678_v6, 4 }
  0xda   : > { %v540_v39 = vshrl.u32 %v2605_v5, 16  ;;  %vm565_vm8 = vc.u32 %v557_v27, %v561_v35  ;;  %v2708_v61 = vor.u32 %v661_v18, %v660_v13  ;;  %v563_v14 = vshll.u32 %v559_v29, 16 }
  0xdb   : > { %v566_v60 = vsel %vm565_vm8, 1, %v3485_v0  ;;  %v567_v30 = vadd.s32 %v561_v35, %v557_v27  ;;  %v665_v40 = vor.u32 %v664_v7, %v663_v38  ;;  %v983_v12 = vand.u32 31, %v981_v8 }
  0xdc   : > { %v551_v45 = vadd.s32 %v550_v62, %v540_v39  ;;  %v568_v41 = vadd.s32 %v566_v60, %v560_v56  ;;  %v2712_v58 = vmul.u32 %v888_v54, %v2652_v34  ;;  %v655_v9 = vshrl.u32 %v3493_v2, %v2663_v42 }
  0xdd   : > { %v682_v5 = vsel %vm672_vm7, %v668_v43, 1326507024  ;;  %vm569_vm9 = vc.u32 %v567_v30, %v563_v14  ;;  %v654_v13 = vshll.u32 %v3495_v28, %v2640_v21  ;;  %v3484_v46 = vand.u32 2147483647, %v2556_v24 }
  0xde   : > { %v542_v15 = vshrl.u32 %v537_v1, 16  ;;  %v570_v17 = vsel %vm569_vm9, 1, %v3485_v0  ;;  %vm669_vm10 = vcmp.lt.s32.totalorder %v2678_v6, 1  ;;  %vm671_vm11 = vcmp.lt.s32.totalorder %v2678_v6, 3 }
  0xdf   : > { %v562_v62 = vshrl.u32 %v2670_v44, 16  ;;  %v572_v54 = vadd.s32 %v570_v17, %v568_v41  ;;  %v681_v56 = vsel %vm669_vm10, %v2704_v50, %v2708_v61  ;;  %v683_v21 = vsel %vm671_vm11, %v665_v40, %v682_v5 }
  0xe0   : > { %v2731_v18 = vsub.s32 32, %v983_v12  ;;  %v2733_v1 = vadd.s32 %v551_v45, %v542_v15  ;;  %v2736_v7 = vmul.u32 %v866_v3, %v2649_v33  ;;  %v656_v20 = vor.u32 %v655_v9, %v654_v13 }
  0xe1   : > { %v564_v26 = vshrl.u32 %v559_v29, 16  ;;  %v573_v27 = vadd.s32 %v572_v54, %v562_v62  ;;  %v867_v41 = vmul.u32 %v865_v63, %v2649_v33  ;;  %vm670_vm12 = vcmp.lt.s32.totalorder %v2678_v6, 2 }
  0xe2   : > { %v678_v44 = vsel %vm672_vm7, %v665_v40, 920167782  ;;  %v2744_v35 = vadd.s32 %v567_v30, %v563_v14  ;;  %v2747_v45 = vmul.u32 %v866_v3, %v2652_v34  ;;  %v2751_v38 = vsel %vm670_vm12, %v681_v56, %v683_v21 }
  0xe3   : > { %v2754_v29 = vand.u32 65535, %v2680_v10  ;;  %v574_v43 = vadd.s32 %v573_v27, %v564_v26  ;;  %v2757_v39 = vshrl.u32 %v2680_v10, 16  ;;  %v976_v60 = vand.u32 8388607, %v3484_v46 }
  0xe4   : > { %v996_v14 = vshrl.u32 %v3489_v57, %v2731_v18  ;;  %vm577_vm13 = vc.u32 %v2733_v1, %v2744_v35  ;;  %v871_v3 = vshll.u32 %v2736_v7, 16  ;;  %v677_v30 = vsel %vm669_vm10, %v656_v20, %v2704_v50 }
  0xe5   : > { %v679_v40 = vsel %vm671_vm11, %v2708_v61, %v678_v44  ;;  %v578_v9 = vadd.s32 1, %v574_v43  ;;  %v2773_v13 = vshrl.u32 %v981_v8, 5  ;;  %v995_v15 = vshll.u32 %v3487_v59, %v983_v12 }
  0xe6   : > { %v999_v17 = vshrl.u32 %v3482_v51, %v2731_v18  ;;  %v987_v62 = vshrl.u32 %v3493_v2, %v2731_v18  ;;  %v990_v54 = vshrl.u32 %v3491_v55, %v2731_v18  ;;  %v993_v56 = vshrl.u32 %v3487_v59, %v2731_v18 }
  0xe7   : > { %v579_v21 = vsel %vm577_vm13, %v578_v9, %v574_v43  ;;  %v997_v26 = vor.u32 %v996_v14, %v995_v15  ;;  %v998_v27 = vshll.u32 %v3489_v57, %v983_v12  ;;  %v2788_v8 = vmul.u32 %v865_v63, %v2652_v34 }
  0xe8   : > { %v3535_v44 = vmul.u32 %v2552_v22, %v2644_v25  ;;  %v977_v46 = vor.u32 8388608, %v976_v60  ;;  %v986_v0 = vshll.u32 %v3495_v28, %v983_v12  ;;  %v989_v5 = vshll.u32 %v3493_v2, %v983_v12 }
  0xe9   : > { %v992_v59 = vshll.u32 %v3491_v55, %v983_v12  ;;  %v680_v43 = vsel %vm670_vm12, %v677_v30, %v679_v40  ;;  %v3536_v14 = vshrl.u32 %v2751_v38, 16  ;;  %v1000_v63 = vor.u32 %v999_v17, %v998_v27 }
  0xea   : > { %v580_v51 = vadd.s32 %v579_v21, %v3535_v44  ;;  %v2803_v15 = vor.u32 %v987_v62, %v986_v0  ;;  %v2805_v22 = vor.u32 %v990_v54, %v989_v5  ;;  %vm1004_vm14 = vcmp.lt.s32.totalorder %v2773_v13, 4 }
  0xeb   : > { %v2801_v37 = vmul.u32 %v3536_v14, %v2754_v29  ;;  %v2807_v25 = vor.u32 %v993_v56, %v992_v59  ;;  %vm2810_vm0 = vc.u32 %v867_v41, %v871_v3  ;;  %v2814_v60 = vadd.s32 %v871_v3, %v867_v41 }
  0xec   : > { %v581_v9 = vadd.s32 536870912, %v580_v51  ;;  %v688_v30 = vand.u32 65535, %v2751_v38  ;;  %v1010_v40 = vsel %vm1004_vm14, %v997_v26, 920167782  ;;  %v653_v0 = vshrl.u32 %v3495_v28, %v2663_v42 }
  0xed   : > { %v674_v59 = vsel %vm672_vm7, %v2708_v61, 2102212464  ;;  %v711_v5 = vshrl.u32 %v680_v43, 16  ;;  %vm1001_vm4 = vcmp.lt.s32.totalorder %v2773_v13, 1  ;;  %v694_v41 = vshll.u32 %v2801_v37, 16 }
  0xee   : > { %v2819_v17 = vshrl.u32 %v581_v9, 30  ;;  %vm1003_vm5 = vcmp.lt.s32.totalorder %v2773_v13, 3  ;;  %v1014_v3 = vsel %vm1004_vm14, %v1000_v63, 1326507024  ;;  %v673_v54 = vsel %vm669_vm10, %v653_v0, %v656_v20 }
  0xef   : > { %v1009_v42 = vsel %vm1001_vm4, %v2803_v15, %v2805_v22  ;;  %v1011_v61 = vsel %vm1003_vm5, %v2807_v25, %v1010_v40  ;;  %v2841_v56 = vshll.u32 %v977_v46, 8  ;;  %v675_v21 = vsel %vm671_vm11, %v2704_v50, %v674_v59 }
  0xf0   : > { %v583_v62 = vshll.u32 %v2819_v17, 30  ;;  %v690_v27 = vmul.u32 %v688_v30, %v2754_v29  ;;  %v2850_v20 = vmul.u32 %v688_v30, %v2757_v39  ;;  %v2853_v14 = vmul.u32 %v711_v5, %v2754_v29 }
  0xf1   : > { %vm1002_vm6 = vcmp.lt.s32.totalorder %v2773_v13, 2  ;;  %v1013_v46 = vsel %vm1001_vm4, %v2805_v22, %v2807_v25  ;;  %v1015_v50 = vsel %vm1003_vm5, %v997_v26, %v1014_v3  ;;  %v710_v9 = vand.u32 65535, %v680_v43 }
  0xf2   : > { %v2847_v44 = vsub.s32 %v580_v51, %v583_v62  ;;  %vm698_vm7 = vc.u32 %v690_v27, %v694_v41  ;;  %v700_v63 = vadd.s32 %v694_v41, %v690_v27  ;;  %v1012_v51 = vsel %vm1002_vm6, %v1009_v42, %v1011_v61 }
  0xf3   : > { %v1018_v30 = vand.u32 65535, %v2841_v56  ;;  %v2870_v59 = vsel %vm670_vm12, %v673_v54, %v675_v21  ;;  %v2874_v26 = vsel %vm1002_vm6, %v1013_v46, %v1015_v50  ;;  %v2877_v41 = vshrl.u32 %v2841_v56, 16 }
  0xf4   : > { %vm585_vm8 = vcmp.lt.s32.totalorder %v2847_v44, 0  ;;  %v586_v0 = vsub.s32 0, %v2847_v44  ;;  %v696_v3 = vshll.u32 %v2850_v20, 16  ;;  %v1043_v43 = vshrl.u32 %v1012_v51, 16 }
  0xf5   : > { %v3539_v42 = vmov 0   ;;  %v716_v27 = vshll.u32 %v2853_v14, 16  ;;  %v3540_v6 = vshrl.u32 %v2751_v38, 16  ;;  %v715_v21 = vmul.u32 %v711_v5, %v2757_v39 }
  0xf6   : > { %v587_v62 = vsel %vm585_vm8, %v586_v0, %v2847_v44  ;;  %v699_v61 = vsel %vm698_vm7, 1, %v3539_v42  ;;  %vm702_vm9 = vc.u32 %v700_v63, %v696_v3  ;;  %v3497_v50 = vshrl.u32 %v2874_v26, 16 }
  0xf7   : > { %v693_v54 = vmul.u32 %v3540_v6, %v2757_v39  ;;  %v588_v46 = vclz %v587_v62  ;;  %v2891_v57 = vsel %vm2810_vm0, 1, %v3539_v42  ;;  %v712_v0 = vmul.u32 %v710_v9, %v2754_v29 }
  0xf8   : > { %v2895_v55 = vmul.u32 %v710_v9, %v2757_v39  ;;  %v1020_v2 = vand.u32 65535, %v2874_v26  ;;  %v1042_v38 = vand.u32 65535, %v1012_v51  ;;  %v2898_v5 = vmul.u32 %v1043_v43, %v1018_v30 }
  0xf9   : > { %v1918_v6 = vadd.s32 4294967294, %v588_v46  ;;  %v701_v28 = vadd.s32 %v699_v61, %v693_v54  ;;  %v703_v63 = vsel %vm702_vm9, 1, %v3539_v42  ;;  %vm720_vm10 = vc.u32 %v712_v0, %v716_v27 }
  0xfa   : > { %v722_v3 = vadd.s32 %v716_v27, %v712_v0  ;;  %v3541_v12 = vand.u32 65535, %v2632_v19  ;;  %v893_v9 = vshll.u32 %v2676_v4, 16  ;;  %v2912_v51 = vmul.u32 %v3497_v50, %v1018_v30 }
  0xfb   : > { %vm1919_vm11 = vcmp.lt.s32.totalorder %v1918_v6, 0  ;;  %v576_v61 = vadd.s32 %v2744_v35, %v2733_v1  ;;  %v718_v54 = vshll.u32 %v2895_v55, 16  ;;  %v705_v0 = vadd.s32 %v703_v63, %v701_v28 }
  0xfc   : > { %v889_v62 = vmul.u32 %v3541_v12, %v2649_v33  ;;  %v3542_v29 = vmov %v3541_v12  ;;  %v591_v27 = vsel %vm1919_vm11, 0, %v1918_v6  ;;  %v721_v19 = vsel %vm720_vm10, 1, %v3539_v42 }
  0xfd   : > { %v2907_v39 = vmul.u32 %v3542_v29, %v2652_v34  ;;  %v592_v46 = vsub.s32 32, %v591_v27  ;;  %v596_v33 = vsub.s32 4294967266, %v591_v27  ;;  %v1022_v34 = vmul.u32 %v1020_v2, %v1018_v30 }
  0xfe   : > { %v1047_v12 = vmul.u32 %v1043_v43, %v2877_v41  ;;  %v1048_v29 = vshll.u32 %v2898_v5, 16  ;;  %vm724_vm12 = vc.u32 %v722_v3, %v718_v54  ;;  %v593_v40 = vshll.u32 %v2847_v44, %v591_v27 }
  0xff   : > { %v594_v50 = vshrl.u32 %v576_v61, %v592_v46  ;;  %v597_v36 = vadd.s32 127, %v596_v33  ;;  %v695_v1 = vshrl.u32 %v2801_v37, 16  ;;  %v1026_v35 = vshll.u32 %v2912_v51, 16 }
 0x100   : > { %v1044_v6 = vmul.u32 %v1042_v38, %v1018_v30  ;;  %v2924_v24 = vmul.u32 %v1042_v38, %v2877_v41  ;;  %v723_v28 = vadd.s32 %v721_v19, %v715_v21  ;;  %v725_v43 = vsel %vm724_vm12, 1, %v3539_v42 }
 0x101   : > { %v595_v63 = vor.u32 %v594_v50, %v593_v40  ;;  %v598_v48 = vshll.u32 %v597_v36, 23  ;;  %v706_v31 = vadd.s32 %v705_v0, %v695_v1  ;;  %v895_v49 = vshll.u32 %v2907_v39, 16 }
 0x102   : > { %vm2928_vm13 = vc.u32 %v889_v62, %v893_v9  ;;  %v2932_v61 = vadd.s32 %v893_v9, %v889_v62  ;;  %v2935_v37 = vmul.u32 %v1020_v2, %v2877_v41  ;;  %vm1052_vm0 = vc.u32 %v1044_v6, %v1048_v29 }
 0x103   : > { %v599_v30 = vor.u32 4788187, %v598_v48  ;;  %v2937_v38 = vadd.s32 %v1048_v29, %v1044_v6  ;;  %v697_v36 = vshrl.u32 %v2850_v20, 16  ;;  %vm1030_vm7 = vc.u32 %v1022_v34, %v1026_v35 }
 0x104   : > { %v1032_v40 = vadd.s32 %v1026_v35, %v1022_v34  ;;  %v717_v21 = vshrl.u32 %v2853_v14, 16  ;;  %v727_v50 = vadd.s32 %v725_v43, %v723_v28  ;;  %v602_v46 = vcvt.s32.f32 %v595_v63 }
 0x105   : > { %v600_v27 = vand.u32 2147483647, %v599_v30  ;;  %v1050_v33 = vshll.u32 %v2924_v24, 16  ;;  %v2942_v62 = vadd.s32 %v706_v31, %v697_v36  ;;  %v1028_v2 = vshll.u32 %v2935_v37, 16 }
 0x106   : > { %v1053_v48 = vsel %vm1052_vm0, 1, %v3539_v42  ;;  %v719_v9 = vshrl.u32 %v2895_v55, 16  ;;  %v728_v0 = vadd.s32 %v727_v50, %v717_v21  ;;  %v1031_v20 = vsel %vm1030_vm7, 1, %v3539_v42 }
 0x107   : > { %v603_v19 = vmul.f32 %v602_v46, %v600_v27  ;;  %vm1056_vm8 = vc.u32 %v2937_v38, %v1050_v33  ;;  %v2951_v14 = vadd.s32 %v722_v3, %v718_v54  ;;  %v3545_v31 = vshrl.u32 %v2874_v26, 16 }
 0x108   : > { %v898_v29 = vsel %vm2928_vm13, 1, %v3539_v42  ;;  %vm1034_vm9 = vc.u32 %v1032_v40, %v1028_v2  ;;  %v729_v55 = vadd.s32 %v728_v0, %v719_v9  ;;  %vm901_vm10 = vc.u32 %v2932_v61, %v895_v49 }
 0x109   : > { %v1025_v34 = vmul.u32 %v3545_v31, %v2877_v41  ;;  %v604_v1 = vxor.u32 2147483648, %v603_v19  ;;  %v1055_v35 = vadd.s32 %v1053_v48, %v1047_v12  ;;  %vm732_vm11 = vc.u32 %v2942_v62, %v2951_v14 }
 0x10a   : > { %v3546_v3 = vshll.u32 %v2788_v8, 16  ;;  %v1057_v41 = vsel %vm1056_vm8, 1, %v3539_v42  ;;  %v733_v54 = vadd.s32 1, %v729_v55  ;;  %v730_v6 = vmul.u32 %v2680_v10, %v2870_v59 }
 0x10b   : > { %v1033_v26 = vadd.s32 %v1031_v20, %v1025_v34  ;;  %v900_v28 = vadd.s32 %v898_v29, %v2712_v58  ;;  %v1035_v63 = vsel %vm1034_vm9, 1, %v3539_v42  ;;  %vm484_vm13 = vcmp.lt.s32.totalorder %v2494_v32, 0 }
 0x10c   : > { %vm879_vm12 = vc.u32 %v2814_v60, %v3546_v3  ;;  %v878_v12 = vadd.s32 %v2891_v57, %v2747_v45  ;;  %v902_v43 = vsel %vm901_vm10, 1, %v3539_v42  ;;  %v734_v44 = vsel %vm732_vm11, %v733_v54, %v729_v55 }
 0x10d   : > { %v880_v60 = vsel %vm879_vm12, 1, %v3539_v42  ;;  %v605_v30 = vsel %vm484_vm13, %v604_v1, %v603_v19  ;;  %v1059_v36 = vadd.s32 %v1057_v41, %v1055_v35  ;;  %v735_v40 = vadd.s32 %v734_v44, %v730_v6 }
 0x10e   : > { %v1037_v10 = vadd.s32 %v1035_v63, %v1033_v26  ;;  %v904_v59 = vadd.s32 %v902_v43, %v900_v28  ;;  %v3547_v58 = vand.u32 2147483647, %v2494_v32  ;;  %v1049_v57 = vshrl.u32 %v2898_v5, 16 }
 0x10f   : > { %v882_v45 = vadd.s32 %v880_v60, %v878_v12  ;;  %v1027_v27 = vshrl.u32 %v2912_v51, 16  ;;  %v736_v46 = vadd.s32 536870912, %v735_v40  ;;  %v894_v2 = vshrl.u32 %v2676_v4, 16 }
 0x110   : > { %vm2981_vm0 = vcmp.le.f32.partialorder %v3547_v58, 0.7853982  ;;  %v1060_v48 = vadd.s32 %v1059_v36, %v1049_v57  ;;  %v872_v9 = vshrl.u32 %v2736_v7, 16  ;;  %v1051_v31 = vshrl.u32 %v2924_v24, 16 }
 0x111   : > { %v2989_v50 = vsel %vm2981_vm0, %v2494_v32, %v605_v30  ;;  %v1038_v0 = vadd.s32 %v1037_v10, %v1027_v27  ;;  %v2994_v19 = vshrl.u32 %v736_v46, 30  ;;  %v905_v20 = vadd.s32 %v904_v59, %v894_v2 }
 0x112   : > { %v2998_v5 = vmul.f32 %v2989_v50, %v2989_v50  ;;  %v883_v34 = vadd.s32 %v882_v45, %v872_v9  ;;  %v1029_v29 = vshrl.u32 %v2935_v37, 16  ;;  %v3550_v4 = vmov 683565275  }
 0x113   : > { %v738_v51 = vshll.u32 %v2994_v19, 30  ;;  %v985_v55 = vshrl.u32 %v3550_v4, %v2731_v18  ;;  %v1006_v7 = vsel %vm1004_vm14, %v2807_v25, 2102212464  ;;  %v896_v1 = vshrl.u32 %v2907_v39, 16 }
 0x114   : > { %v1061_v35 = vadd.s32 %v1060_v48, %v1051_v31  ;;  %v830_v3 = vshrl.u32 %v3550_v4, %v2534_v11  ;;  %v874_v26 = vshrl.u32 %v2788_v8, 16  ;;  %v3012_v41 = vadd.s32 %v1038_v0, %v1029_v29 }
 0x115   : > { %v739_v37 = vsub.s32 %v735_v40, %v738_v51  ;;  %v851_v54 = vsel %vm849_vm15, %v2584_v53, 2102212464  ;;  %v1005_v18 = vsel %vm1001_vm4, %v985_v55, %v2803_v15  ;;  %v906_v25 = vadd.s32 %v905_v20, %v896_v1 }
 0x116   : > { %v618_v6 = vmul.f32 -0.00019511016, %v2998_v5  ;;  %v1007_v11 = vsel %vm1003_vm5, %v2805_v22, %v1006_v7  ;;  %v3024_v28 = vadd.s32 %v883_v34, %v874_v26  ;;  %v3029_v8 = vadd.s32 %v2937_v38, %v1050_v33 }
 0x117   : > { %vm740_vm14 = vcmp.lt.s32.totalorder %v739_v37, 0  ;;  %v1065_v53 = vadd.s32 1, %v1061_v35  ;;  %v741_v63 = vsub.s32 0, %v739_v37  ;;  %v850_v15 = vsel %vm846_vm1, %v830_v3, %v2580_v47 }
 0x118   : > { %v852_v12 = vsel %vm848_vm2, %v2582_v52, %v851_v54  ;;  %v3040_v22 = vadd.s32 %v2932_v61, %v895_v49  ;;  %vm1064_vm15 = vc.u32 %v3012_v41, %v3029_v8  ;;  %v1008_v24 = vsel %vm1002_vm6, %v1005_v18, %v1007_v11 }
 0x119   : > { %v910_v38 = vadd.s32 1, %v906_v25  ;;  %v619_v33 = vadd.f32 0.008332121, %v618_v6  ;;  %v742_v43 = vsel %vm740_vm14, %v741_v63, %v739_v37  ;;  %v853_v52 = vsel %vm847_vm3, %v850_v15, %v852_v12  ;;  %v3551_v6 = vld [vmem:[#allocation23_spill] sm:$0xff] }
 0x11a   : > { %vm909_vm1 = vc.u32 %v3024_v28, %v3040_v22  ;;  %v743_v47 = vclz %v742_v43  ;;  %v611_v39 = vmul.f32 -0.001358992, %v2998_v5  ;;  %v1066_v49 = vsel %vm1064_vm15, %v1065_v53, %v1061_v35 }
 0x11b   : > { %v1062_v61 = vmul.u32 %v2841_v56, %v1008_v24  ;;  %v911_v60 = vsel %vm909_vm1, %v910_v38, %v906_v25  ;;  %v620_v13 = vmul.f32 %v619_v33, %v2998_v5  ;;  %v907_v30 = vmul.u32 %v2624_v16, %v853_v52 }
 0x11c   : > { %v1921_v44 = vadd.s32 4294967294, %v743_v47  ;;  %v612_v40 = vadd.f32 0.041655596, %v611_v39  ;;  %v731_v23 = vadd.s32 %v2951_v14, %v2942_v62  ;;  %v606_v27 = vsub.s32 4, %v2819_v17 }
 0x11d   : > { %v1067_v36 = vadd.s32 %v1066_v49, %v1062_v61  ;;  %v912_v10 = vadd.s32 %v911_v60, %v907_v30  ;;  %v621_v58 = vadd.f32 -0.16666654, %v620_v13  ;;  %vm639_vm3 = vcmp.lt.s32.totalorder %v3551_v6, 0 }
 0x11e   : > { %vm1922_vm2 = vcmp.lt.s32.totalorder %v1921_v44, 0  ;;  %v613_v46 = vmul.f32 %v612_v40, %v2998_v5  ;;  %v607_v34 = vsel %vm484_vm13, %v606_v27, %v2819_v17  ;;  %v3552_v53 = vand.u32 2147483647, %v3551_v6 }
 0x11f   : > { %v746_v59 = vsel %vm1922_vm2, 0, %v1921_v44  ;;  %v1068_v56 = vadd.s32 536870912, %v1067_v36  ;;  %v913_v16 = vadd.s32 536870912, %v912_v10  ;;  %v622_v0 = vmul.f32 %v621_v58, %v2998_v5 }
 0x120   : > { %v747_v57 = vsub.s32 32, %v746_v59  ;;  %v751_v45 = vsub.s32 4294967266, %v746_v59  ;;  %v748_v2 = vshll.u32 %v739_v37, %v746_v59  ;;  %v614_v14 = vadd.f32 -0.4999988, %v613_v46 }
 0x121   : > { %v3062_v62 = vshrl.u32 %v1068_v56, 30  ;;  %v3064_v51 = vshrl.u32 %v913_v16, 30  ;;  %v609_v55 = vsel %vm2981_vm0, 0, %v607_v34  ;;  %v623_v7 = vadd.f32 1.0, %v622_v0 }
 0x122   : > { %v749_v48 = vshrl.u32 %v731_v23, %v747_v57  ;;  %v752_v9 = vadd.s32 127, %v751_v45  ;;  %v615_v26 = vmul.f32 %v614_v14, %v2998_v5  ;;  %v626_v54 = vadd.s32 3, %v609_v55 }
 0x123   : > { %v1070_v3 = vshll.u32 %v3062_v62, 30  ;;  %v915_v17 = vshll.u32 %v3064_v51, 30  ;;  %v624_v18 = vmul.f32 %v623_v7, %v2989_v50  ;;  %vm3077_vm4 = vcmp.le.f32.partialorder %v3552_v53, 0.7853982 }
 0x124   : > { %v750_v20 = vor.u32 %v749_v48, %v748_v2  ;;  %v753_v31 = vshll.u32 %v752_v9, 23  ;;  %v616_v21 = vadd.f32 1.0, %v615_v26  ;;  %v627_v15 = vand.u32 3, %v626_v54  ;;  %v3101_v9 = vpop.permute.xlu1 %796  ;;  %v3555_v54 = vld [vmem:[#allocation20_spill] sm:$0xff] }
 0x125   : > { %v3073_v11 = vsub.s32 %v1067_v36, %v1070_v3  ;;  %v761_v12 = vsub.s32 4, %v2994_v19  ;;  %v3087_v24 = vsub.s32 %v912_v10, %v915_v17  ;;  %v630_v38 = vxor.u32 2147483648, %v624_v18 }
 0x126   : > { %v754_v29 = vor.u32 4788187, %v753_v31  ;;  %v757_v35 = vcvt.s32.f32 %v750_v20  ;;  %v633_v47 = vxor.u32 2147483648, %v616_v21  ;;  %vm629_vm6 = vcmp.eq.s32.totalorder %v627_v15, 0 }
 0x127   : > { %v1073_v43 = vsub.s32 0, %v3073_v11  ;;  %vm1072_vm5 = vcmp.lt.s32.totalorder %v3073_v11, 0  ;;  %v762_v49 = vsel %vm639_vm3, %v761_v12, %v2994_v19  ;;  %v918_v61 = vsub.s32 0, %v3087_v24 }
 0x128   : > { %v755_v1 = vand.u32 2147483647, %v754_v29  ;;  %v631_v44 = vsel %vm629_vm6, %v616_v21, %v630_v38  ;;  %vm917_vm7 = vcmp.lt.s32.totalorder %v3087_v24, 0  ;;  %vm628_vm8 = vcmp.lt.s32.totalorder %v627_v15, 2 }
 0x129   : > { %vm632_vm9 = vcmp.eq.s32.totalorder %v627_v15, 2  ;;  %v1074_v30 = vsel %vm1072_vm5, %v1073_v43, %v3073_v11  ;;  %v764_v40 = vsel %vm3077_vm4, 0, %v762_v49  ;;  %v919_v19 = vsel %vm917_vm7, %v918_v61, %v3087_v24  ;;  %v3556_v15 = vld [vmem:[#allocation22_spill] sm:$0xff] }
 0x12a   : > { %v758_v37 = vmul.f32 %v757_v35, %v755_v1  ;;  %v634_v36 = vsel %vm632_vm9, %v633_v47, %v624_v18  ;;  %vm625_vm10 = vweird.f32 %v2494_v32  ;;  %v1075_v45 = vclz %v1074_v30 }
 0x12b   : > { %v635_v58 = vsel %vm628_vm8, %v631_v44, %v634_v36  ;;  %v781_v27 = vadd.s32 3, %v764_v40  ;;  %v920_v48 = vclz %v919_v19  ;;  %vm780_vm15 = vweird.f32 %v3551_v6 }
 0x12c   : > { %v759_v25 = vxor.u32 2147483648, %v758_v37  ;;  %v636_v56 = vsel %vm625_vm10, nan, %v635_v58  ;;  %v1927_v31 = vadd.s32 4294967294, %v1075_v45  ;;  %v3106_v21 = vpop.permute.xlu1 %801  ;;  %v1063_v49 = vadd.s32 %v3029_v8, %v3012_v41 }
 0x12d   : > { %v792_v20 = vmul.f32 %v636_v56, %v636_v56  ;;  %v782_v34 = vand.u32 3, %v781_v27  ;;  %v1924_v55 = vadd.s32 4294967294, %v920_v48 }
 0x12e   : > { %v760_v5 = vsel %vm639_vm3, %v759_v25, %v758_v37  ;;  %vm1928_vm11 = vcmp.lt.s32.totalorder %v1927_v31, 0 }
 0x12f   : > { %v763_v50 = vsel %vm3077_vm4, %v3551_v6, %v760_v5  ;;  %v804_v1 = vmul.f32 %v3101_v9, %v792_v20  ;;  %vm784_vm12 = vcmp.eq.s32.totalorder %v782_v34, 0  ;;  %vm787_vm13 = vcmp.eq.s32.totalorder %v782_v34, 2 }
 0x130   : > { %v765_v33 = vmul.f32 %v763_v50, %v763_v50  ;;  %vm783_vm0 = vcmp.lt.s32.totalorder %v782_v34, 2  ;;  %vm1925_vm14 = vcmp.lt.s32.totalorder %v1924_v55, 0  ;;  %v1078_v26 = vsel %vm1928_vm11, 0, %v1927_v31  ;;  %v2116_v31 = vld [vmem:[%s2467_s5 + $0x8] sm:$0xff] }
 0x131   : > { %v806_v17 = vadd.f32 %v804_v1, %v3555_v54  ;;  %v923_v25 = vsel %vm1925_vm14, 0, %v1924_v55  ;;  %v1083_v53 = vsub.s32 4294967266, %v1078_v26  ;;  %v1079_v6 = vsub.s32 32, %v1078_v26 }
 0x132   : > { %v766_v52 = vmul.f32 -0.001358992, %v765_v33  ;;  %v773_v39 = vmul.f32 -0.00019511016, %v765_v33  ;;  %v928_v5 = vsub.s32 4294967266, %v923_v25  ;;  %v1080_v40 = vshll.u32 %v3073_v11, %v1078_v26  ;;  %v3558_v11 = vld [vmem:[#allocation21_spill] sm:$0xff] }
 0x133   : > { %v1084_v38 = vadd.s32 127, %v1083_v53  ;;  %v1081_v30 = vshrl.u32 %v1063_v49, %v1079_v6  ;;  %vm816_vm2 = vcmp.lt.s32.totalorder %v3558_v11, 0  ;;  %v3562_v20 = vand.u32 2147483647, %v3558_v11 }
 0x134   : > { %v767_v60 = vadd.f32 0.041655596, %v766_v52  ;;  %v774_v13 = vadd.f32 0.008332121, %v773_v39  ;;  %v929_v43 = vadd.s32 127, %v928_v5  ;;  %v924_v39 = vsub.s32 32, %v923_v25 }
 0x135   : > { %v1085_v61 = vshll.u32 %v1084_v38, 23  ;;  %v1082_v19 = vor.u32 %v1081_v30, %v1080_v40  ;;  %vm3133_vm4 = vcmp.le.f32.partialorder %v3562_v20, 0.7853982  ;;  %v1093_v53 = vsub.s32 4, %v3062_v62 }
 0x136   : > { %v768_v10 = vmul.f32 %v767_v60, %v765_v33  ;;  %v775_v59 = vmul.f32 %v774_v13, %v765_v33  ;;  %v908_v60 = vadd.s32 %v3040_v22, %v3024_v28  ;;  %v930_v13 = vshll.u32 %v929_v43, 23 }
 0x137   : > { %v1089_v8 = vcvt.s32.f32 %v1082_v19 }
 0x138   : > { %v769_v23 = vadd.f32 -0.4999988, %v768_v10  ;;  %v776_v57 = vadd.f32 -0.16666654, %v775_v59  ;;  %v926_v36 = vshrl.u32 %v908_v60, %v924_v39  ;;  %v1086_v10 = vor.u32 4788187, %v1085_v61 }
 0x139   : > { %v925_v59 = vshll.u32 %v3087_v24, %v923_v25  ;;  %v931_v58 = vor.u32 4788187, %v930_v13 }
 0x13a   : > { %v770_v46 = vmul.f32 %v769_v23, %v765_v33  ;;  %v777_v2 = vmul.f32 %v776_v57, %v765_v33  ;;  %v1087_v57 = vand.u32 2147483647, %v1086_v10 }
 0x13b   : > { %v927_v23 = vor.u32 %v926_v36, %v925_v59  ;;  %v932_v41 = vand.u32 2147483647, %v931_v58 }
 0x13c   : > { %v771_v16 = vadd.f32 1.0, %v770_v46  ;;  %v778_v0 = vadd.f32 1.0, %v777_v2  ;;  %v1090_v27 = vmul.f32 %v1089_v8, %v1087_v57  ;;  %v3557_v46 = vld [vmem:[#allocation24_spill] sm:$0xff] }
 0x13d   : > { %v934_v45 = vcvt.s32.f32 %v927_v23  ;;  %vm971_vm1 = vcmp.lt.s32.totalorder %v3557_v46, 0  ;;  %v3559_v48 = vand.u32 2147483647, %v3557_v46  ;;  %vm1112_vm11 = vweird.f32 %v3557_v46 }
 0x13e   : > { %v779_v14 = vmul.f32 %v778_v0, %v763_v50  ;;  %v788_v29 = vxor.u32 2147483648, %v771_v16  ;;  %v808_v50 = vpack.c.bf16 %v806_v17, %v806_v17  ;;  %v1091_v28 = vxor.u32 2147483648, %v1090_v27 }
 0x13f   : > { %v935_v56 = vmul.f32 %v934_v45, %v932_v41  ;;  %vm3124_vm3 = vcmp.le.f32.partialorder %v3559_v48, 0.7853982 }
 0x140   : > { %v785_v7 = vxor.u32 2147483648, %v779_v14  ;;  %v789_v35 = vsel %vm787_vm13, %v788_v29, %v779_v14  ;;  %v1139_v47 = vunpack.c.l.b16 %v808_v50  ;;  %v1092_v2 = vsel %vm971_vm1, %v1091_v28, %v1090_v27 }
 0x141   : > { %v936_v22 = vxor.u32 2147483648, %v935_v56  ;;  %v1095_v0 = vsel %vm3124_vm3, %v3557_v46, %v1092_v2  ;;  %vm1144_vm13 = vcmask 23552  }
 0x142   : > { %v786_v32 = vsel %vm784_vm12, %v771_v16, %v785_v7  ;;  %v1097_v14 = vmul.f32 %v1095_v0, %v1095_v0  ;;  %vm957_vm12 = vweird.f32 %v3558_v11 }
 0x143   : > { %v790_v3 = vsel %vm783_vm0, %v786_v32, %v789_v35  ;;  %v937_v24 = vsel %vm816_vm2, %v936_v22, %v935_v56 }
 0x144   : > { %v791_v37 = vsel %vm780_vm15, nan, %v790_v3  ;;  %v940_v34 = vsel %vm3133_vm4, %v3558_v11, %v937_v24  ;;  %v1105_v55 = vmul.f32 -0.00019511016, %v1097_v14  ;;  %v1098_v35 = vmul.f32 -0.001358992, %v1097_v14 }
 0x145   : > { %v793_v18 = vmul.f32 %v791_v37, %v791_v37  ;;  %v942_v29 = vmul.f32 %v940_v34, %v940_v34 }
 0x146   : > { %v1106_v1 = vadd.f32 0.008332121, %v1105_v55  ;;  %v1099_v17 = vadd.f32 0.041655596, %v1098_v35 }
 0x147   : > { %v805_v63 = vmul.f32 %v3106_v21, %v793_v18  ;;  %v950_v7 = vmul.f32 -0.00019511016, %v942_v29  ;;  %v943_v3 = vmul.f32 -0.001358992, %v942_v29 }
 0x148   : > { %v1107_v26 = vmul.f32 %v1106_v1, %v1097_v14  ;;  %v1100_v5 = vmul.f32 %v1099_v17, %v1097_v14 }
 0x149   : > { %v807_v12 = vadd.f32 %v805_v63, %v3556_v15  ;;  %v951_v32 = vadd.f32 0.008332121, %v950_v7  ;;  %v944_v18 = vadd.f32 0.041655596, %v943_v3 }
 0x14a   : > { %v1108_v25 = vadd.f32 -0.16666654, %v1107_v26  ;;  %v1101_v6 = vadd.f32 -0.4999988, %v1100_v5  ;;  %v3164_v26 = vld [vmem:[%s3467_s6 + $0x8] sm:$0xff] }
 0x14b   : > { %v809_v33 = vpack.c.bf16 %v807_v12, %v807_v12  ;;  %v952_v37 = vmul.f32 %v951_v32, %v942_v29  ;;  %v938_v12 = vsub.s32 4, %v3064_v51  ;;  %v945_v50 = vmul.f32 %v944_v18, %v942_v29 }
 0x14c   : > { %v1109_v38 = vmul.f32 %v1108_v25, %v1097_v14  ;;  %v1102_v60 = vmul.f32 %v1101_v6, %v1097_v14  ;;  %v2117_v14 = vld [vmem:[%s2467_s5] sm:$0xff] }
 0x14d   : > { %v1140_v52 = vunpack.c.l.b16 %v809_v33  ;;  %v953_v63 = vadd.f32 -0.16666654, %v952_v37  ;;  %v1094_v33 = vsel %vm971_vm1, %v1093_v53, %v3062_v62  ;;  %v439_v37 = vadd.f32 1e-09, %v3164_v26 }
 0x14e   : > { %v1096_v39 = vsel %vm3124_vm3, 0, %v1094_v33  ;;  %v1110_v49 = vadd.f32 1.0, %v1109_v38  ;;  %v1103_v10 = vadd.f32 1.0, %v1102_v60  ;;  %v1380_v38 = vld [vmem:[%s3465_s4 + $0x8] sm:$0xff] }
 0x14f   : > { %v1141_v44 = vpack.c.b16 %v1140_v52, %v1139_v47  ;;  %v954_v43 = vmul.f32 %v953_v63, %v942_v29  ;;  %v939_v47 = vsel %vm816_vm2, %v938_v12, %v3064_v51  ;;  %v946_v52 = vadd.f32 -0.4999988, %v945_v50 }
 0x150   : > { %v941_v61 = vsel %vm3133_vm4, 0, %v939_v47  ;;  %v1113_v13 = vadd.s32 3, %v1096_v39  ;;  %v1111_v36 = vmul.f32 %v1110_v49, %v1095_v0  ;;  %v1120_v57 = vxor.u32 2147483648, %v1103_v10 }
 0x151   : > { %1142 = vrot.lane.b32.xlu2 %v1141_v44, %s2292_s13  ;;  %v955_v44 = vadd.f32 1.0, %v954_v43  ;;  %v947_v30 = vmul.f32 %v946_v52, %v942_v29  ;;  %v958_v62 = vadd.s32 3, %v941_v61  ;;  %vm460_vm15 = vweird.f32 %v439_v37  ;;  %s1783_s13 = sadd.s32 %s2264_s30, %s2001_s26  ;;  %s1773_s30 = scalar_lea.sflag [#allocation4], %s2454_s29 }
 0x152   : > { %v1114_v59 = vand.u32 3, %v1113_v13  ;;  %v1117_v19 = vxor.u32 2147483648, %v1111_v36  ;;  %v466_v43 = vand.u32 2147483648, %v439_v37  ;;  %v464_v39 = vand.u32 2147483647, %v439_v37 }
 0x153   : > { %v956_v40 = vmul.f32 %v955_v44, %v940_v34  ;;  %v948_v58 = vadd.f32 1.0, %v947_v30  ;;  %v959_v51 = vand.u32 3, %v958_v62  ;;  %v1991_v62 = vld [vmem:[%s3463_s2] sm:$0xff] }
 0x154   : > { %vm1116_vm5 = vcmp.eq.s32.totalorder %v1114_v59, 0  ;;  %vm1119_vm7 = vcmp.eq.s32.totalorder %v1114_v59, 2  ;;  %vm1115_vm8 = vcmp.lt.s32.totalorder %v1114_v59, 2  ;;  %v467_v61 = vor.u32 1.1754944e-38, %v466_v43 }
 0x155   : > { %v962_v23 = vxor.u32 2147483648, %v956_v40  ;;  %v965_v41 = vxor.u32 2147483648, %v948_v58  ;;  %v1118_v8 = vsel %vm1116_vm5, %v1103_v10, %v1117_v19  ;;  %vm961_vm6 = vcmp.eq.s32.totalorder %v959_v51, 0 }
 0x156   : > { %v1121_v27 = vsel %vm1119_vm7, %v1120_v57, %v1111_v36  ;;  %vm964_vm9 = vcmp.eq.s32.totalorder %v959_v51, 2  ;;  %vm960_vm10 = vcmp.lt.s32.totalorder %v959_v51, 2  ;;  %vm465_vm5 = vcmp.eq.f32.partialorder %v464_v39, 8.507059e+37  ;;  %v1735_v36 = vld [vmem:[%s3468_s7 + $0x8] sm:$0xff]  ;;  %v1993_v57 = vld [vmem:[%s3463_s2 + $0x10] sm:$0xff] }
 0x157   : > { %v963_v45 = vsel %vm961_vm6, %v948_v58, %v962_v23  ;;  %v1122_v56 = vsel %vm1115_vm8, %v1118_v8, %v1121_v27  ;;  %v966_v28 = vsel %vm964_vm9, %v965_v41, %v956_v40  ;;  %vm1169_vm6 = vcmask 130048   ;;  %v1992_v23 = vld [vmem:[%s3463_s2 + $0x8] sm:$0xff] }
 0x158   : > { %v967_v22 = vsel %vm960_vm10, %v963_v45, %v966_v28  ;;  %v1123_v2 = vsel %vm1112_vm11, nan, %v1122_v56  ;;  %vm1166_vm7 = vcmask 1039360   ;;  %vm1221_vm8 = vcmask 1031168   ;;  %v1994_v56 = vld [vmem:[%s3463_s2 + $0x18] sm:$0xff] }
 0x159   : > { %v968_v24 = vsel %vm957_vm12, nan, %v967_v22  ;;  %v1125_v48 = vmul.f32 %v1123_v2, %v1123_v2  ;;  %vm1255_vm9 = vcmask 1022976   ;;  %vm1289_vm10 = vcmask 1014784  }
 0x15a   : > { %v1124_v16 = vmul.f32 %v968_v24, %v968_v24  ;;  %vm1357_vm11 = vcmask 998400   ;;  %v1379_v24 = vld [vmem:[%s3465_s4] sm:$0xff]  ;;  %vm1323_vm12 = vcmask 1006592  }
 0x15b   : > { %v1127_v0 = vmul.f32 %v1125_v48, %v3106_v21 }
 0x15c   : > { %v1126_v20 = vmul.f32 %v1124_v16, %v3101_v9  ;;  %v436_v9 = vld [vmem:[%s3467_s6] sm:$0xff] }
 0x15d   : > { %v1129_v34 = vadd.f32 %v2116_v31, %v1127_v0  ;;  %v438_v21 = vadd.f32 1e-09, %v436_v9  ;;  %v1995_v0 = vld [vmem:[%s3463_s2 + $0x20] sm:$0xff] }
 0x15e   : > { %v1128_v29 = vadd.f32 %v2117_v14, %v1126_v20  ;;  %v1997_v20 = vld [vmem:[%s3463_s2 + $0x30] sm:$0xff] }
 0x15f   : > { %v1131_v55 = vpack.c.bf16 %v1129_v34, %v1129_v34  ;;  %2112 = vrcp.f32 %v438_v21  ;;  %vm445_vm0 = vweird.f32 %v438_v21  ;;  %v451_v33 = vand.u32 2147483648, %v438_v21 }
 0x160   : > { %v1130_v7 = vpack.c.bf16 %v1128_v29, %v1128_v29  ;;  %2114 = vrcp.f32 %v439_v37  ;;  %v449_v47 = vand.u32 2147483647, %v438_v21  ;;  %v1996_v29 = vld [vmem:[%s3463_s2 + $0x28] sm:$0xff] }
 0x161   : > { %v1135_v1 = vunpack.c.l.b16 %v1131_v55  ;;  %v452_v49 = vor.u32 1.1754944e-38, %v451_v33  ;;  %v1734_v55 = vld [vmem:[%s3468_s7] sm:$0xff] }
 0x162   : > { %v1134_v32 = vunpack.c.l.b16 %v1130_v7  ;;  %vm450_vm4 = vcmp.eq.f32.partialorder %v449_v47, 8.507059e+37 }
 0x164   : > { %v1136_v46 = vpack.c.b16 %v1135_v1, %v1134_v32 }
 0x165   : > { %v2113_v17 = vpop.eup %2112 }
 0x166   : > { %v2115_v18 = vpop.eup %2114  ;;  %v441_v25 = vmul.f32 %v2113_v17, %v438_v21  ;;  %vm446_vm14 = vweird.f32 %v2113_v17 }
 0x167   : > { %v456_v53 = vmul.f32 %v2115_v18, %v439_v37  ;;  %vm461_vm1 = vweird.f32 %v2115_v18  ;;  %vm447_vm2 = vmor %vm445_vm0, %vm446_vm14 }
 0x168   : > { %v442_v63 = vsub.f32 1.0, %v441_v25  ;;  %vm462_vm3 = vmor %vm460_vm15, %vm461_vm1 }
 0x169   : > { %v457_v5 = vsub.f32 1.0, %v456_v53 }
 0x16a   : > { %v443_v12 = vmul.f32 %v2113_v17, %v442_v63 }
 0x16b   : > { %v458_v50 = vmul.f32 %v2115_v18, %v457_v5 }
 0x16c   : > { %v444_v6 = vadd.f32 %v2113_v17, %v443_v12 }
 0x16d   : > { %v459_v52 = vadd.f32 %v2115_v18, %v458_v50 }
 0x16e   : > { %v448_v44 = vsel %vm447_vm2, %v2113_v17, %v444_v6 }
 0x16f   : > { %v463_v60 = vsel %vm462_vm3, %v2115_v18, %v459_v52  ;;  %v453_v13 = vsel %vm450_vm4, %v452_v49, %v448_v44 }
 0x170   : > { %v468_v30 = vsel %vm465_vm5, %v467_v61, %v463_v60 }
 0x1ab   : > { %v1143_v35 = vpop.permute.xlu2 %1142 }
 0x1ac   : > { %v1147_v3 = vsel %vm1144_vm13, %v1136_v46, %v1143_v35  ;;  %v1149_v11 = vsel %vm1144_vm13, %v1143_v35, %v1136_v46 }
 0x1ad   : > { %1219 = vrot.lane.b32.xlu0 %v1149_v11, %s2293_s14  ;;  %1162 = vrot.lane.b32.xlu1 %v1147_v3, %s2294_s27 }
 0x1ae   : > { %1217 = vrot.lane.b32.xlu2 %v1147_v3, %s2293_s14  ;;  %1202 = vmatpush.bf16.msra.mxu1 %v1147_v3  ;;  %s1988_s14 = sshll.u32 %s1783_s13, 3 }
 0x1b1   : > { %1940 = vmatmul.msk.bf16.vlgmr.msra.gmra.mxu1 %vm1169_vm6, %v1991_v62 }
 0x1b5   : > { %1251 = vrot.lane.b32.xlu0 %v1147_v3, %s2295_s23  ;;  %1253 = vrot.lane.b32.xlu1 %v1149_v11, %s2295_s23  ;;  %s1785_s23 = scalar_lea.hbm %s3576_s24, %s1988_s14 }
 0x1b6   : > { %1164 = vrot.lane.b32.xlu2 %v1149_v11, %s2294_s27  ;;  %s388_s27 = scalar_lea.vmem [#allocation7], %s2457_s11 }
 0x1bd   : > { %1355 = vrot.lane.b32.xlu0 %v1149_v11, %s2296_s17  ;;  %1285 = vrot.lane.b32.xlu1 %v1147_v3, %s2297_s8 }
 0x1be   : > { %1353 = vrot.lane.b32.xlu2 %v1147_v3, %s2296_s17  ;;  %s1786_s17 = sshll.u32 %s388_s27, 4  ;;  %s1787_s17 = int_to_ptr.vmem [resolvable:$true] %s1786_s17 }
 0x1c5   : > { %1319 = vrot.lane.b32.xlu0 %v1147_v3, %s2298_s15  ;;  %1321 = vrot.lane.b32.xlu1 %v1149_v11, %s2298_s15 }
 0x1c6   : > { %1287 = vrot.lane.b32.xlu2 %v1149_v11, %s2297_s8  ;;  %s1788_s8 = sshll.u32 %s1785_s23, 4  ;;  %s1789_s8 = int_to_ptr.hbm [resolvable:$true] %s1788_s8 }
 0x1c7   : > { %s2192_s15 = sshra.s32 %s1789_s8, 4  ;;  %s2193_s15 = int_to_ptr.hbm [resolvable:$true] %s2192_s15 }
 0x1c8   : > { %s2194_s11 = scalar_lea.hbm %s2193_s15, 16  ;;  %p2199_p7 = scmp.lt.s32.totalorder %s2193_s15, %s3576_s24 }
 0x1c9   : > { %p2195_p4 = scmp.ne.s32.totalorder %s2193_s15, %s2194_s11  ;;  %p2200_p8 = scmp.lt.s32.totalorder %s2198_s9, %s2194_s11 }
 0x1cb   : > { %p2196_p5 = pnand %p2195_p4, %p2412_p9  ;;  %p2201_p10 = por %p2200_p8, %p2199_p7 }
 0x1cd   : > { %1388 = vperm.xlu0 %2105, %v1380_v38   ;;  %1395 = vperm.xlu1 %2106, %v436_v9   ;;  %p2197_p6 = pneg %p2196_p5 }
 0x1ce   : > { %1383 = vperm.xlu2 %2107, %v1379_v24   ;;  %v3565_v24 = vmov 2475754826  }
 0x1cf   : > { %p2202_p11 = pnand %p2201_p10, %p2197_p6 }
 0x1d5   : > { %1719 = vperm.xlu0 %2105, %v453_v13   ;;  %1724 = vperm.xlu1 %2106, %v468_v30  }
 0x1d6   : > { %1400 = vperm.xlu2 %2107, %v3164_v26  }
 0x1dd   : > { %1743 = vperm.xlu0 %2105, %v1735_v36  }
 0x1de   : > { %1738 = vperm.xlu2 %2107, %v1734_v55   ;;  %v3568_v55 = vmov 920167782  }
 0x208   : > { %v1218_v40 = vpop.permute.xlu2 %1217 }
 0x210   : > { %v1165_v10 = vpop.permute.xlu2 %1164 }
 0x218   : > { %v1354_v41 = vpop.permute.xlu2 %1353 }
 0x21f   : > { %v1220_v59 = vpop.permute.xlu0 %1219  ;;  %v1163_v58 = vpop.permute.xlu1 %1162 }
 0x220   : > { %v1167_v19 = vsel %vm1166_vm7, %v1163_v58, %v1165_v10  ;;  %v1222_v51 = vsel %vm1221_vm8, %v1218_v40, %v1220_v59  ;;  %v1288_v28 = vpop.permute.xlu2 %1287 }
 0x221   : > { %1180 = vmatpush.bf16.msra.mxu0 %v1167_v19  ;;  %1234 = vmatpush.bf16.msra.mxu2 %v1222_v51 }
 0x224   : > { %1935 = vmatmul.msk.bf16.vlgmr.msra.gmra.mxu0 %vm1169_vm6, %v1992_v23  ;;  %1947 = vmatmul.msk.bf16.vlgmr.msra.gmra.mxu2 %vm1169_vm6, %v1993_v57 }
 0x227   : > { %v1252_v8 = vpop.permute.xlu0 %1251  ;;  %v1254_v45 = vpop.permute.xlu1 %1253 }
 0x228   : > { %v1256_v27 = vsel %vm1255_vm9, %v1252_v8, %v1254_v45  ;;  %v1384_v33 = vpop.permute.xlu2 %1383 }
 0x229   : > { %1268 = vmatpush.bf16.msra.mxu3 %v1256_v27 }
 0x22c   : > { %1954 = vmatmul.msk.bf16.vlgmr.msra.gmra.mxu3 %vm1169_vm6, %v1994_v56 }
 0x22e   : > { %v1204_v1 = vpop.f32.mrf.mxu1 }
 0x22f   : > { %v1356_v22 = vpop.permute.xlu0 %1355  ;;  %v1286_v2 = vpop.permute.xlu1 %1285 }
 0x230   : > { %v1290_v48 = vsel %vm1289_vm10, %v1286_v2, %v1288_v28  ;;  %v1358_v16 = vsel %vm1357_vm11, %v1354_v41, %v1356_v22  ;;  %v1401_v59 = vpop.permute.xlu2 %1400 }
 0x231   : > { %1302 = vmatpush.bf16.msrb.mxu0 %v1290_v48  ;;  %1370 = vmatpush.bf16.msrb.mxu2 %v1358_v16  ;;  %v3566_v16 = vmov 2131351028  }
 0x234   : > { %1961 = vmatmul.msk.bf16.vlgmr.msrb.gmra.mxu0 %vm1169_vm6, %v1995_v0  ;;  %1975 = vmatmul.msk.bf16.vlgmr.msrb.gmra.mxu2 %vm1169_vm6, %v1997_v20  ;;  %v3567_v20 = vmov 2102212464  }
 0x236   : > { %v1206_v9 = vpop.f32.mrf.mxu1 }
 0x237   : > { %v1320_v31 = vpop.permute.xlu0 %1319  ;;  %v1322_v34 = vpop.permute.xlu1 %1321 }
 0x238   : > { %v1324_v14 = vsel %vm1323_vm12, %v1320_v31, %v1322_v34 }
 0x239   : > { %1336 = vmatpush.bf16.msrb.mxu1 %v1324_v14 }
 0x23c   : > { %1968 = vmatmul.msk.bf16.vlgmr.msrb.gmra.mxu1 %vm1169_vm6, %v1996_v29 }
 0x23f   : > { %v1396_v47 = vpop.permute.xlu1 %1395  ;;  %v1389_v36 = vpop.permute.xlu0 %1388 }
 0x2a1   : > { %v1182_v7 = vpop.f32.mrf.mxu0 }
 0x2a2   : > { %v1205_v35 = vadd.f32 %v1204_v1, %v1182_v7 }
 0x2a7   : > { %v1236_v32 = vpop.f32.mrf.mxu2 }
 0x2a8   : > { %v1241_v21 = vadd.f32 %v1236_v32, %v1205_v35  ;;  %v3569_v32 = vmov 1326507024  }
 0x2a9   : > { %v1184_v46 = vpop.f32.mrf.mxu0 }
 0x2aa   : > { %v1207_v26 = vadd.f32 %v1206_v9, %v1184_v46 }
 0x2af   : > { %v1238_v3 = vpop.f32.mrf.mxu2  ;;  %v1270_v11 = vpop.f32.mrf.mxu3 }
 0x2b0   : > { %v1275_v17 = vadd.f32 %v1270_v11, %v1241_v21  ;;  %v1242_v5 = vadd.f32 %v1238_v3, %v1207_v26 }
 0x2b1   : > { %v1304_v37 = vpop.f32.mrf.mxu0 }
 0x2b2   : > { %v1309_v18 = vadd.f32 %v1304_v37, %v1275_v17 }
 0x2b7   : > { %v1272_v25 = vpop.f32.mrf.mxu3  ;;  %v1372_v53 = vpop.f32.mrf.mxu2 }
 0x2b8   : > { %v1276_v50 = vadd.f32 %v1272_v25, %v1242_v5 }
 0x2b9   : > { %v1338_v63 = vpop.f32.mrf.mxu1  ;;  %v1306_v43 = vpop.f32.mrf.mxu0 }
 0x2ba   : > { %v1343_v12 = vadd.f32 %v1338_v63, %v1309_v18  ;;  %v1310_v52 = vadd.f32 %v1306_v43, %v1276_v50 }
 0x2bc   : > { %v1377_v38 = vadd.f32 %v1372_v53, %v1343_v12 }
 0x2be   : > { %v3208_v6 = vadd.f32 %v1384_v33, %v1377_v38 }
 0x2bf   : > { %v1374_v60 = vpop.f32.mrf.mxu2 }
 0x2c0   : > { %v3211_v39 = vmul.f32 %v1396_v47, %v3208_v6 }
 0x2c1   : > { %v1340_v49 = vpop.f32.mrf.mxu1 }
 0x2c2   : > { %v1408_v61 = vand.u32 2139095040, %v3211_v39  ;;  %v1344_v44 = vadd.f32 %v1340_v49, %v1310_v52  ;;  %v1405_v62 = vand.u32 2147483647, %v3211_v39 }
 0x2c4   : > { %v1409_v13 = vshrl.u32 %v1408_v61, 23  ;;  %v1378_v30 = vadd.f32 %v1374_v60, %v1344_v44  ;;  %v1412_v51 = vand.u32 8388607, %v1405_v62 }
 0x2c6   : > { %v1976_v40 = vadd.s32 4294967169, %v1409_v13  ;;  %v3215_v10 = vadd.f32 %v1389_v36, %v1378_v30  ;;  %v1413_v56 = vor.u32 8388608, %v1412_v51 }
 0x2c8   : > { %v1415_v58 = vadd.s32 1, %v1976_v40  ;;  %v3218_v19 = vmul.f32 %v1401_v59, %v3215_v10  ;;  %v3239_v26 = vshll.u32 %v1413_v56, 8 }
 0x2ca   : > { %vm1416_vm13 = vcmp.gt.s32.totalorder %v1415_v58, 0  ;;  %v1560_v23 = vand.u32 2147483647, %v3218_v19  ;;  %v1563_v41 = vand.u32 2139095040, %v3218_v19  ;;  %v1454_v43 = vand.u32 65535, %v3239_v26 }
 0x2cb   : > { %v1417_v57 = vsel %vm1416_vm13, %v1415_v58, 0  ;;  %v1455_v52 = vshrl.u32 %v3239_v26, 16 }
 0x2cc   : > { %v1419_v8 = vand.u32 31, %v1417_v57  ;;  %v1564_v45 = vshrl.u32 %v1563_v41, 23  ;;  %v1567_v27 = vand.u32 8388607, %v1560_v23  ;;  %v3226_v28 = vshrl.u32 %v1417_v57, 5 }
 0x2ce   : > { %v1420_v22 = vsub.s32 32, %v1419_v8  ;;  %v1422_v2 = vshll.u32 %v3550_v4, %v1419_v8  ;;  %v1425_v48 = vshll.u32 %v3565_v24, %v1419_v8  ;;  %v1428_v0 = vshll.u32 %v3566_v16, %v1419_v8 }
 0x2cf   : > { %v1431_v31 = vshll.u32 %v3567_v20, %v1419_v8  ;;  %v1434_v1 = vshll.u32 %v3568_v55, %v1419_v8  ;;  %v1979_v35 = vadd.s32 4294967169, %v1564_v45  ;;  %v1568_v3 = vor.u32 8388608, %v1567_v27 }
 0x2d0   : > { %v1423_v34 = vshrl.u32 %v3565_v24, %v1420_v22  ;;  %v1426_v14 = vshrl.u32 %v3566_v16, %v1420_v22  ;;  %v1429_v29 = vshrl.u32 %v3567_v20, %v1420_v22  ;;  %v1432_v7 = vshrl.u32 %v3568_v55, %v1420_v22 }
 0x2d1   : > { %v1435_v46 = vshrl.u32 %v3569_v32, %v1420_v22  ;;  %vm1440_vm0 = vcmp.lt.s32.totalorder %v3226_v28, 4  ;;  %v1570_v18 = vadd.s32 1, %v1979_v35  ;;  %vm1437_vm14 = vcmp.lt.s32.totalorder %v3226_v28, 1 }
 0x2d2   : > { %v1424_v11 = vor.u32 %v1423_v34, %v1422_v2  ;;  %v1427_v9 = vor.u32 %v1426_v14, %v1425_v48  ;;  %v1430_v21 = vor.u32 %v1429_v29, %v1428_v0  ;;  %v1433_v37 = vor.u32 %v1432_v7, %v1431_v31 }
 0x2d3   : > { %v1436_v17 = vor.u32 %v1435_v46, %v1434_v1  ;;  %v3244_v53 = vshll.u32 %v1568_v3, 8  ;;  %vm1439_vm15 = vcmp.lt.s32.totalorder %v3226_v28, 3  ;;  %vm1571_vm1 = vcmp.gt.s32.totalorder %v1570_v18, 0 }
 0x2d4   : > { %v1446_v25 = vsel %vm1440_vm0, %v1433_v37, 920167782  ;;  %v1445_v63 = vsel %vm1437_vm14, %v1424_v11, %v1427_v9  ;;  %v1449_v50 = vsel %vm1437_vm14, %v1427_v9, %v1430_v21  ;;  %v1572_v33 = vsel %vm1571_vm1, %v1570_v18, 0 }
 0x2d5   : > { %v1450_v5 = vsel %vm1440_vm0, %v1436_v17, 1326507024  ;;  %v1447_v12 = vsel %vm1439_vm15, %v1430_v21, %v1446_v25  ;;  %v1574_v47 = vand.u32 31, %v1572_v33  ;;  %v3260_v49 = vand.u32 65535, %v3244_v53 }
 0x2d6   : > { %v1451_v38 = vsel %vm1439_vm15, %v1433_v37, %v1450_v5  ;;  %v1421_v61 = vshrl.u32 %v3550_v4, %v1420_v22  ;;  %vm1438_vm2 = vcmp.lt.s32.totalorder %v3226_v28, 2  ;;  %v3264_v44 = vshrl.u32 %v1572_v33, 5 }
 0x2d7   : > { %v3266_v60 = vsub.s32 32, %v1574_v47  ;;  %v1448_v13 = vsel %vm1438_vm2, %v1445_v63, %v1447_v12  ;;  %v1452_v30 = vsel %vm1438_vm2, %v1449_v50, %v1451_v38  ;;  %v1577_v36 = vshll.u32 %v3550_v4, %v1574_v47 }
 0x2d8   : > { %v1580_v40 = vshll.u32 %v3565_v24, %v1574_v47  ;;  %v1586_v59 = vshll.u32 %v3567_v20, %v1574_v47  ;;  %v1442_v58 = vsel %vm1440_vm0, %v1430_v21, 2102212464  ;;  %v1583_v45 = vshll.u32 %v3566_v16, %v1574_v47 }
 0x2d9   : > { %v1578_v51 = vshrl.u32 %v3565_v24, %v3266_v60  ;;  %v1581_v57 = vshrl.u32 %v3566_v16, %v3266_v60  ;;  %v1584_v41 = vshrl.u32 %v3567_v20, %v3266_v60  ;;  %v1587_v8 = vshrl.u32 %v3568_v55, %v3266_v60 }
 0x2da   : > { %v1590_v27 = vshrl.u32 %v3569_v32, %v3266_v60  ;;  %v1456_v56 = vand.u32 65535, %v1452_v30  ;;  %v1479_v22 = vshrl.u32 %v1448_v13, 16  ;;  %v1589_v0 = vshll.u32 %v3568_v55, %v1574_v47 }
 0x2db   : > { %v3288_v2 = vor.u32 %v1578_v51, %v1577_v36  ;;  %v3290_v48 = vor.u32 %v1581_v57, %v1580_v40  ;;  %v1588_v24 = vor.u32 %v1587_v8, %v1586_v59  ;;  %v3293_v31 = vor.u32 %v1584_v41, %v1583_v45 }
 0x2dc   : > { %v3296_v20 = vshrl.u32 %v3244_v53, 16  ;;  %v1457_v34 = vshrl.u32 %v1452_v30, 16  ;;  %v1478_v14 = vand.u32 65535, %v1448_v13  ;;  %v1591_v16 = vor.u32 %v1590_v27, %v1589_v0 }
 0x2dd   : > { %vm1595_vm3 = vcmp.lt.s32.totalorder %v3264_v44, 4  ;;  %v1441_v29 = vsel %vm1437_vm14, %v1421_v61, %v1424_v11  ;;  %v1443_v7 = vsel %vm1439_vm15, %v1427_v9, %v1442_v58  ;;  %vm1592_vm4 = vcmp.lt.s32.totalorder %v3264_v44, 1 }
 0x2de   : > { %v1601_v55 = vsel %vm1595_vm3, %v1588_v24, 920167782  ;;  %v1459_v1 = vmul.u32 %v1457_v34, %v1454_v43  ;;  %v1460_v32 = vmul.u32 %v1456_v56, %v1455_v52  ;;  %vm1594_vm5 = vcmp.lt.s32.totalorder %v3264_v44, 3 }
 0x2df   : > { %v1600_v46 = vsel %vm1592_vm4, %v3288_v2, %v3290_v48  ;;  %v1458_v35 = vmul.u32 %v1456_v56, %v1454_v43  ;;  %v1481_v3 = vmul.u32 %v1479_v22, %v1454_v43  ;;  %v1604_v11 = vsel %vm1592_vm4, %v3290_v48, %v3293_v31 }
 0x2e0   : > { %v1462_v9 = vshll.u32 %v1459_v1, 16  ;;  %v1480_v21 = vmul.u32 %v1478_v14, %v1454_v43  ;;  %v1482_v37 = vmul.u32 %v1478_v14, %v1455_v52  ;;  %v1602_v17 = vsel %vm1594_vm5, %v3293_v31, %v1601_v55 }
 0x2e1   : > { %v1605_v18 = vsel %vm1595_vm3, %v1591_v16, 1326507024  ;;  %v1461_v25 = vmul.u32 %v1457_v34, %v1455_v52  ;;  %v1484_v63 = vshll.u32 %v1481_v3, 16  ;;  %v1464_v5 = vshll.u32 %v1460_v32, 16 }
 0x2e2   : > { %vm1466_vm7 = vc.u32 %v1458_v35, %v1462_v9  ;;  %v1468_v12 = vadd.s32 %v1462_v9, %v1458_v35  ;;  %v1483_v50 = vmul.u32 %v1479_v22, %v1455_v52  ;;  %v1486_v33 = vshll.u32 %v1482_v37, 16 }
 0x2e3   : > { %v1467_v38 = vsel %vm1466_vm7, 1, %v3539_v42  ;;  %vm1488_vm8 = vc.u32 %v1480_v21, %v1484_v63  ;;  %v1490_v47 = vadd.s32 %v1484_v63, %v1480_v21  ;;  %v1606_v43 = vsel %vm1594_vm5, %v1588_v24, %v1605_v18 }
 0x2e4   : > { %v1469_v61 = vadd.s32 %v1467_v38, %v1461_v25  ;;  %vm1470_vm9 = vc.u32 %v1468_v12, %v1464_v5  ;;  %v1489_v13 = vsel %vm1488_vm8, 1, %v3539_v42  ;;  %vm1593_vm11 = vcmp.lt.s32.totalorder %v3264_v44, 2 }
 0x2e5   : > { %v1471_v30 = vsel %vm1470_vm9, 1, %v3539_v42  ;;  %v1491_v36 = vadd.s32 %v1489_v13, %v1483_v50  ;;  %vm1492_vm10 = vc.u32 %v1490_v47, %v1486_v33  ;;  %v1463_v40 = vshrl.u32 %v1459_v1, 16 }
 0x2e6   : > { %v1473_v52 = vadd.s32 %v1471_v30, %v1469_v61  ;;  %v1493_v59 = vsel %vm1492_vm10, 1, %v3539_v42  ;;  %v1603_v58 = vsel %vm1593_vm11, %v1600_v46, %v1602_v17  ;;  %v1444_v51 = vsel %vm1438_vm2, %v1441_v29, %v1443_v7 }
 0x2e7   : > { %v1485_v57 = vshrl.u32 %v1481_v3, 16  ;;  %v1495_v41 = vadd.s32 %v1493_v59, %v1491_v36  ;;  %v1607_v8 = vsel %vm1593_vm11, %v1604_v11, %v1606_v43  ;;  %v1465_v45 = vshrl.u32 %v1460_v32, 16 }
 0x2e8   : > { %v1474_v27 = vadd.s32 %v1473_v52, %v1463_v40  ;;  %v1611_v56 = vand.u32 65535, %v1607_v8  ;;  %v1612_v22 = vshrl.u32 %v1607_v8, 16  ;;  %v1487_v24 = vshrl.u32 %v1482_v37, 16 }
 0x2e9   : > { %v1496_v0 = vadd.s32 %v1495_v41, %v1485_v57  ;;  %v1633_v34 = vand.u32 65535, %v1603_v58  ;;  %v1634_v14 = vshrl.u32 %v1603_v58, 16  ;;  %v3335_v55 = vadd.s32 %v1490_v47, %v1486_v33 }
 0x2ea   : > { %v3333_v16 = vadd.s32 %v1474_v27, %v1465_v45  ;;  %v1614_v28 = vmul.u32 %v1612_v22, %v3260_v49  ;;  %v1615_v29 = vmul.u32 %v1611_v56, %v3296_v20  ;;  %v1498_v32 = vmul.u32 %v3239_v26, %v1444_v51 }
 0x2eb   : > { %v1497_v7 = vadd.s32 %v1496_v0, %v1487_v24  ;;  %v1636_v1 = vmul.u32 %v1634_v14, %v3260_v49  ;;  %v1613_v46 = vmul.u32 %v1611_v56, %v3260_v49  ;;  %v1635_v11 = vmul.u32 %v1633_v34, %v3260_v49 }
 0x2ec   : > { %vm1500_vm12 = vc.u32 %v3333_v16, %v3335_v55  ;;  %v1617_v35 = vshll.u32 %v1614_v28, 16  ;;  %v1637_v9 = vmul.u32 %v1633_v34, %v3296_v20  ;;  %v1616_v37 = vmul.u32 %v1612_v22, %v3296_v20 }
 0x2ed   : > { %v1501_v3 = vadd.s32 1, %v1497_v7  ;;  %v1639_v21 = vshll.u32 %v1636_v1, 16  ;;  %v1619_v17 = vshll.u32 %v1615_v29, 16  ;;  %v1638_v63 = vmul.u32 %v1634_v14, %v3296_v20 }
 0x2ee   : > { %vm1621_vm13 = vc.u32 %v1613_v46, %v1617_v35  ;;  %v1623_v18 = vadd.s32 %v1617_v35, %v1613_v46  ;;  %v1641_v38 = vshll.u32 %v1637_v9, 16  ;;  %v1618_v61 = vshrl.u32 %v1614_v28, 16 }
 0x2ef   : > { %v1502_v25 = vsel %vm1500_vm12, %v1501_v3, %v1497_v7  ;;  %v1622_v26 = vsel %vm1621_vm13, 1, %v3539_v42  ;;  %vm1643_vm0 = vc.u32 %v1635_v11, %v1639_v21  ;;  %v1645_v33 = vadd.s32 %v1639_v21, %v1635_v11 }
 0x2f0   : > { %v1503_v5 = vadd.s32 %v1502_v25, %v1498_v32  ;;  %v1624_v12 = vadd.s32 %v1622_v26, %v1616_v37  ;;  %vm1625_vm14 = vc.u32 %v1623_v18, %v1619_v17  ;;  %v1644_v50 = vsel %vm1643_vm0, 1, %v3539_v42 }
 0x2f1   : > { %v1626_v49 = vsel %vm1625_vm14, 1, %v3539_v42  ;;  %v1646_v47 = vadd.s32 %v1644_v50, %v1638_v63  ;;  %v1576_v30 = vshrl.u32 %v3550_v4, %v3266_v60  ;;  %v1597_v20 = vsel %vm1595_vm3, %v3293_v31, 2102212464 }
 0x2f2   : > { %v1504_v43 = vadd.s32 536870912, %v1503_v5  ;;  %v1628_v13 = vadd.s32 %v1626_v49, %v1624_v12  ;;  %vm1647_vm15 = vc.u32 %v1645_v33, %v1641_v38  ;;  %v1620_v40 = vshrl.u32 %v1615_v29, 16 }
 0x2f3   : > { %v1648_v59 = vsel %vm1647_vm15, 1, %v3539_v42  ;;  %v1640_v58 = vshrl.u32 %v1636_v1, 16  ;;  %v1596_v41 = vsel %vm1592_vm4, %v1576_v30, %v3288_v2  ;;  %v1598_v4 = vsel %vm1594_vm5, %v3290_v48, %v1597_v20 }
 0x2f4   : > { %v3356_v36 = vshrl.u32 %v1504_v43, 30  ;;  %v1629_v52 = vadd.s32 %v1628_v13, %v1618_v61  ;;  %v1650_v51 = vadd.s32 %v1648_v59, %v1646_v47  ;;  %v1642_v31 = vshrl.u32 %v1637_v9, 16 }
 0x2f5   : > { %v1649_v27 = vadd.s32 %v1645_v33, %v1641_v38  ;;  %v1599_v42 = vsel %vm1593_vm11, %v1596_v41, %v1598_v4  ;;  %v1499_v44 = vadd.s32 %v3335_v55, %v3333_v16  ;;  %vm1407_vm7 = vcmp.lt.s32.totalorder %v3211_v39, 0 }
 0x2f6   : > { %v1506_v57 = vshll.u32 %v3356_v36, 30  ;;  %v1630_v60 = vadd.s32 %v1629_v52, %v1620_v40  ;;  %v1651_v8 = vadd.s32 %v1650_v51, %v1640_v58  ;;  %v1653_v2 = vmul.u32 %v3244_v53, %v1599_v42 }
 0x2f7   : > { %vm3377_vm8 = vcmp.le.f32.partialorder %v1405_v62, 0.7853982  ;;  %v1529_v51 = vsub.s32 4, %v3356_v36  ;;  %vm1562_vm9 = vcmp.lt.s32.totalorder %v3218_v19, 0  ;;  %vm3395_vm10 = vcmp.le.f32.partialorder %v1560_v23, 0.7853982 }
 0x2f8   : > { %v1507_v45 = vsub.s32 %v1503_v5, %v1506_v57  ;;  %v1652_v56 = vadd.s32 %v1651_v8, %v1642_v31  ;;  %vm1655_vm2 = vc.u32 %v1630_v60, %v1649_v27  ;;  %v1654_v33 = vadd.s32 %v1649_v27, %v1630_v60 }
 0x2f9   : > { %v1530_v27 = vsel %vm1407_vm7, %v1529_v51, %v3356_v36  ;;  %vm1548_vm0 = vweird.f32 %v3211_v39  ;;  %v1725_v51 = vpop.permute.xlu1 %1724 }
 0x2fa   : > { %vm1508_vm1 = vcmp.lt.s32.totalorder %v1507_v45, 0  ;;  %v1509_v22 = vsub.s32 0, %v1507_v45  ;;  %v1656_v24 = vadd.s32 1, %v1652_v56 }
 0x2fc   : > { %v1510_v0 = vsel %vm1508_vm1, %v1509_v22, %v1507_v45  ;;  %v1657_v14 = vsel %vm1655_vm2, %v1656_v24, %v1652_v56  ;;  %v1532_v24 = vsel %vm3377_vm8, 0, %v1530_v27  ;;  %vm1703_vm2 = vweird.f32 %v3218_v19 }
 0x2fd   : > { %v1511_v34 = vclz %v1510_v0  ;;  %v1658_v28 = vadd.s32 %v1657_v14, %v1653_v2  ;;  %v1549_v36 = vadd.s32 3, %v1532_v24 }
 0x2ff   : > { %v1977_v48 = vadd.s32 4294967294, %v1511_v34  ;;  %v1659_v29 = vadd.s32 536870912, %v1658_v28 }
 0x301   : > { %vm1978_vm3 = vcmp.lt.s32.totalorder %v1977_v48, 0  ;;  %v3369_v1 = vshrl.u32 %v1659_v29, 30 }
 0x302   : > { %v1514_v7 = vsel %vm1978_vm3, 0, %v1977_v48 }
 0x303   : > { %v1515_v32 = vsub.s32 32, %v1514_v7  ;;  %v1519_v46 = vsub.s32 4294967266, %v1514_v7  ;;  %v1661_v35 = vshll.u32 %v3369_v1, 30  ;;  %v1516_v3 = vshll.u32 %v1507_v45, %v1514_v7 }
 0x304   : > { %v1684_v29 = vsub.s32 4, %v3369_v1 }
 0x305   : > { %v1517_v11 = vshrl.u32 %v1499_v44, %v1515_v32  ;;  %v1520_v9 = vadd.s32 127, %v1519_v46  ;;  %v1662_v53 = vsub.s32 %v1658_v28, %v1661_v35 }
 0x307   : > { %v1518_v21 = vor.u32 %v1517_v11, %v1516_v3  ;;  %v1521_v37 = vshll.u32 %v1520_v9, 23  ;;  %vm1663_vm4 = vcmp.lt.s32.totalorder %v1662_v53, 0  ;;  %v1664_v17 = vsub.s32 0, %v1662_v53 }
 0x308   : > { %v1550_v11 = vand.u32 3, %v1549_v36  ;;  %v1685_v9 = vsel %vm1562_vm9, %v1684_v29, %v3369_v1 }
 0x309   : > { %v1522_v18 = vor.u32 4788187, %v1521_v37  ;;  %v1665_v25 = vsel %vm1663_vm4, %v1664_v17, %v1662_v53  ;;  %v1525_v63 = vcvt.s32.f32 %v1518_v21  ;;  %v1687_v17 = vsel %vm3395_vm10, 0, %v1685_v9 }
 0x30a   : > { %v1666_v5 = vclz %v1665_v25  ;;  %vm1552_vm11 = vcmp.eq.s32.totalorder %v1550_v11, 0  ;;  %vm1555_vm12 = vcmp.eq.s32.totalorder %v1550_v11, 2  ;;  %vm1551_vm13 = vcmp.lt.s32.totalorder %v1550_v11, 2 }
 0x30b   : > { %v1523_v26 = vand.u32 2147483647, %v1522_v18 }
 0x30c   : > { %v1980_v50 = vadd.s32 4294967294, %v1666_v5 }
 0x30d   : > { %v1526_v12 = vmul.f32 %v1525_v63, %v1523_v26 }
 0x30e   : > { %vm1981_vm5 = vcmp.lt.s32.totalorder %v1980_v50, 0 }
 0x30f   : > { %v1527_v16 = vxor.u32 2147483648, %v1526_v12  ;;  %v1669_v49 = vsel %vm1981_vm5, 0, %v1980_v50 }
 0x310   : > { %v1670_v47 = vsub.s32 32, %v1669_v49  ;;  %v1674_v43 = vsub.s32 4294967266, %v1669_v49  ;;  %v1671_v30 = vshll.u32 %v1662_v53, %v1669_v49 }
 0x311   : > { %v1528_v38 = vsel %vm1407_vm7, %v1527_v16, %v1526_v12  ;;  %v1704_v12 = vadd.s32 3, %v1687_v17 }
 0x312   : > { %v1531_v61 = vsel %vm3377_vm8, %v3211_v39, %v1528_v38  ;;  %v1672_v20 = vshrl.u32 %v1654_v33, %v1670_v47  ;;  %v1675_v40 = vadd.s32 127, %v1674_v43 }
 0x313   : > { %v1533_v13 = vmul.f32 %v1531_v61, %v1531_v61  ;;  %v1705_v33 = vand.u32 3, %v1704_v12 }
 0x314   : > { %v1673_v59 = vor.u32 %v1672_v20, %v1671_v30  ;;  %v1676_v58 = vshll.u32 %v1675_v40, 23 }
 0x315   : > { %v1534_v52 = vmul.f32 -0.001358992, %v1533_v13  ;;  %v1541_v62 = vmul.f32 -0.00019511016, %v1533_v13  ;;  %vm1707_vm14 = vcmp.eq.s32.totalorder %v1705_v33, 0  ;;  %vm1710_vm15 = vcmp.eq.s32.totalorder %v1705_v33, 2 }
 0x316   : > { %v1677_v4 = vor.u32 4788187, %v1676_v58  ;;  %v1680_v45 = vcvt.s32.f32 %v1673_v59  ;;  %vm1706_vm1 = vcmp.lt.s32.totalorder %v1705_v33, 2 }
 0x317   : > { %v1535_v57 = vadd.f32 0.041655596, %v1534_v52  ;;  %v1542_v41 = vadd.f32 0.008332121, %v1541_v62  ;;  %v1720_v62 = vpop.permute.xlu0 %1719 }
 0x318   : > { %v1678_v8 = vand.u32 2147483647, %v1677_v4 }
 0x319   : > { %v1536_v60 = vmul.f32 %v1535_v57, %v1533_v13  ;;  %v1543_v31 = vmul.f32 %v1542_v41, %v1533_v13 }
 0x31a   : > { %v1681_v22 = vmul.f32 %v1680_v45, %v1678_v8 }
 0x31b   : > { %v1537_v42 = vadd.f32 -0.4999988, %v1536_v60  ;;  %v1544_v56 = vadd.f32 -0.16666654, %v1543_v31  ;;  %v1998_v31 = vld [vmem:[%s3575_s20] sm:$0xff] }
 0x31c   : > { %v1682_v2 = vxor.u32 2147483648, %v1681_v22 }
 0x31d   : > { %v1545_v0 = vmul.f32 %v1544_v56, %v1533_v13  ;;  %v1538_v34 = vmul.f32 %v1537_v42, %v1533_v13 }
 0x31e   : > { %v1683_v48 = vsel %vm1562_vm9, %v1682_v2, %v1681_v22 }
 0x31f   : > { %v1546_v14 = vadd.f32 1.0, %v1545_v0  ;;  %v1686_v7 = vsel %vm3395_vm10, %v3218_v19, %v1683_v48  ;;  %v1539_v46 = vadd.f32 1.0, %v1538_v34  ;;  %v1739_v19 = vpop.permute.xlu2 %1738 }
 0x320   : > { %v1688_v32 = vmul.f32 %v1686_v7, %v1686_v7 }
 0x321   : > { %v1547_v44 = vmul.f32 %v1546_v14, %v1531_v61  ;;  %v1556_v37 = vxor.u32 2147483648, %v1539_v46 }
 0x322   : > { %v1689_v35 = vmul.f32 -0.001358992, %v1688_v32  ;;  %v1696_v3 = vmul.f32 -0.00019511016, %v1688_v32 }
 0x323   : > { %v1553_v23 = vxor.u32 2147483648, %v1547_v44  ;;  %v1557_v50 = vsel %vm1555_vm12, %v1556_v37, %v1547_v44 }
 0x324   : > { %v1690_v53 = vadd.f32 0.041655596, %v1689_v35  ;;  %v1697_v21 = vadd.f32 0.008332121, %v1696_v3 }
 0x325   : > { %v1554_v26 = vsel %vm1552_vm11, %v1539_v46, %v1553_v23 }
 0x326   : > { %v1691_v18 = vmul.f32 %v1690_v53, %v1688_v32  ;;  %v1698_v25 = vmul.f32 %v1697_v21, %v1688_v32  ;;  %v1558_v1 = vsel %vm1551_vm13, %v1554_v26, %v1557_v50 }
 0x327   : > { %v1559_v47 = vsel %vm1548_vm0, nan, %v1558_v1 }
 0x328   : > { %v1692_v63 = vadd.f32 -0.4999988, %v1691_v18  ;;  %v1699_v5 = vadd.f32 -0.16666654, %v1698_v25  ;;  %v1715_v30 = vmul.f32 %v1559_v47, %v1559_v47 }
 0x32a   : > { %v1693_v16 = vmul.f32 %v1692_v63, %v1688_v32  ;;  %v1700_v55 = vmul.f32 %v1699_v5, %v1688_v32  ;;  %v1727_v39 = vmul.f32 %v1720_v62, %v1715_v30 }
 0x32c   : > { %v1694_v49 = vadd.f32 1.0, %v1693_v16  ;;  %v1701_v38 = vadd.f32 1.0, %v1700_v55  ;;  %v1729_v41 = vadd.f32 %v1727_v39, %v3208_v6  ;;  %v1744_v6 = vpop.permute.xlu0 %1743 }
 0x32e   : > { %v1702_v43 = vmul.f32 %v1701_v38, %v1686_v7  ;;  %v1711_v61 = vxor.u32 2147483648, %v1694_v49 }
 0x330   : > { %v1708_v13 = vxor.u32 2147483648, %v1702_v43  ;;  %v1712_v40 = vsel %vm1710_vm15, %v1711_v61, %v1702_v43 }
 0x332   : > { %v1709_v20 = vsel %vm1707_vm14, %v1694_v49, %v1708_v13 }
 0x333   : > { %v1713_v52 = vsel %vm1706_vm1, %v1709_v20, %v1712_v40 }
 0x334   : > { %v1714_v59 = vsel %vm1703_vm2, nan, %v1713_v52 }
 0x335   : > { %v1716_v58 = vmul.f32 %v1714_v59, %v1714_v59 }
 0x337   : > { %v1728_v57 = vmul.f32 %v1725_v51, %v1716_v58 }
 0x339   : > { %v1730_v4 = vadd.f32 %v1728_v57, %v3215_v10 }
 0x33b   : > { %v1731_v60 = vpack.c.bf16 %v1730_v4, %v1729_v41 }
 0x33d   : > { %1761 = vmatpush.bf16.msrb.mxu3 %v1731_v60 }
 0x340   : > { %1986 = vmatmul.msk.bf16.vlgmr.msrb.gmra.mxu3 %vm1169_vm6, %v1998_v31 }
 0x3c3   : > { %v1763_v8 = vpop.f32.mrf.mxu3 }
 0x3c4   : > { %v1764_v45 = vadd.f32 %v1763_v8, %v1739_v19 }
 0x3c6   : > { %v1768_v27 = vadd.f32 %v1764_v45, %v3555_v54 }
 0x3c8   : > { %1770 = vst [vmem:[%s388_s27] sm:$0xff] %v1768_v27 }
 0x3cb   : > { %v1765_v10 = vpop.f32.mrf.mxu3 }
 0x3cc   : > { %v1766_v42 = vadd.f32 %v1765_v10, %v1744_v6 }
 0x3ce   : > { %v1769_v56 = vadd.f32 %v1766_v42, %v3556_v15 }
 0x3d0   : > { %1771 = vst [vmem:[%s388_s27 + $0x8] sm:$0xff] %v1769_v56 }
 0x3d1   : > { %2205 = shalt.err (!%p2202_p11)
}
 0x3d2   : > { %s2299_s29 = smov 128   ;;  %s2300_s25 = smov 384  }
 0x3d3   : > { %s2301_s20 = smov 8  }
 0x3d4   : > { %2006 = dma.vmem_to_hbm [thread:$0]  (%p2412_p9), %s1787_s17, 256, %s1789_s8, %s1773_s30, %s2299_s29, %s2300_s25, %s2301_s20  }
 0x3d5 PF: > { %s3578_s26 = sld [smem:[#allocation11_spill]]  ;;  %p2020_p13 = scmp.ge.s32.totalorder %s2280_s12, 2 }
 0x3d7   : > { %p2016_p0 = pnand %p2020_p13, %p2418_p12 }
 0x3d9   : > { %p2017_p1 = pneg %p2016_p0 }
 0x3db   : > { %s1803_s14 = sand.u32 1, %s3578_s26  }
 0x3dc   : > { %s1804_s27 = scalar_lea.sflag [#allocation4], %s1803_s14 }
 0x3dd   : > { %2247 = dma.done.wait (%p2017_p1), %s1804_s27, 256  }
 0x3de   : > { %2249 = vsyncadd (%p2017_p1), %s1804_s27, 4294967040  ;;  %s27_s12 = sadd.s32 1, %s2280_s12   ;;  %s3580_s19 = sld [smem:[#allocation12_spill]] }
 0x3df   : > { %p24_p2 = scmp.ge.s32.totalorder %s27_s12, 8   ;;  %s3581_s29 = sld [smem:[#allocation19_spill]] }
 0x3e0   : > { %s3582_s9 = sld [smem:[#allocation14_spill]]  ;;  %s3585_s27 = smov %s2256_s28 }
 0x3e1   : > { %s3583_s18 = sld [smem:[#allocation15_spill]]  ;;  %s3587_s30 = smov %s2272_s10 }
 0x3e2   : > { %s3584_s11 = sld [smem:[#allocation16_spill]] }
 0x3e3   :  { %26 = sbr.rel (!%p24_p2) target bundleno = 13 (0xd), region = 116 }
 0x3e4   : > { %s3586_s28 = smov %s3580_s19 }
 0x3e7   : > { %s3588_s10 = smov %s3583_s18 }
 0x3e8   :  { %1810 = vsyncpa [#allocation3], 1 }
 0x3e9   :  { %1812 = vsyncpa [#allocation3 + $0x1], 1 }
 0x3ea   :  { %1813 = vsyncpa [#allocation6], 1 }
 0x3eb   :  { %1815 = vsyncpa [#allocation6 + $0x1], 1 }
 0x3ec   :  { %1816 = vsyncpa [#allocation4], 1 }
 0x3ed   :  { %1818 = vsyncpa [#allocation4 + $0x1], 1 }

</bundles_post_ra>
